<compile_context>
chip_gen: v6e
topology: v6e:2x2x1
jax: 0.10.0
libtpu: 0.0.40
codegen_flags: <defaults>
</compile_context>

<pallas_src>
import math

import jax
import jax.numpy as jnp
import numpy as np
from jax.experimental import pallas as pl
from jax.experimental.pallas import tpu as pltpu


def _round_up(n: int, m: int) -> int:
    return ((n + m - 1) // m) * m


def _pos_emb_kernel(base_ref, sin_lo_ref, cos_lo_ref, o_ref):
    """One row-tile of the position-encoding table via angle addition.

    base_ref:   (2, D)      sin/cos of (tile_base * freq) for THIS grid step
                            (row 0 = sin, row 1 = cos); tiny, re-fetched per step.
    sin_lo_ref: (tile_s, D) sin(r*freq + phase), r in [0, tile_s)  -- resident.
    cos_lo_ref: (tile_s, D) cos(r*freq + phase)                    -- resident.
    o_ref:      (tile_s, D) output rows [i*tile_s, (i+1)*tile_s).

    o[r, c] = sin_base[c]*cos_lo[r, c] + cos_base[c]*sin_lo[r, c]
            = sin((tile_base + r)*freq[c] + phase[c])
    Pure VALU work (2 mul + 1 add per element), no EUP, no iota.
    """
    sin_b = base_ref[0:1, :]  # (1, D), broadcast over rows
    cos_b = base_ref[1:2, :]  # (1, D)
    o_ref[...] = (sin_b * cos_lo_ref[...] + cos_b * sin_lo_ref[...]).astype(o_ref.dtype)


def _build_table(seq_len: int, d_model: int, out_dtype=jnp.float32) -> jax.Array:
    """Builds the (seq_len, d_model) sinusoidal table with the kernel."""
    assert d_model % 2 == 0, "d_model must be even (sin/cos interleave)"

    # ---- Row-tile selection -------------------------------------------------
    s8 = _round_up(seq_len, 8)
    bytes_per_row = d_model * 4
    # Per-tile byte cap 4 MiB: worst case (2x output double-buffer + 2x each
    # resident lo table) ~= 6 tiles ~= 24 MiB, under the 32 MiB limit we request
    # below on every generation (v5e / v6e / v7x).
    max_rows = max(8, ((4 * 1024 * 1024) // bytes_per_row) // 8 * 8)
    tile_s = min(s8, 2048, max_rows)
    # v7x has 2 TensorCores that only split parallel grid axes: give long
    # sequences at least 2 grid steps (extra step ~0.35 us on single-TC chips).
    if s8 >= 1024:
        tile_s = min(tile_s, _round_up((s8 + 1) // 2, 8))
    tile_s = max(8, tile_s)
    n_tiles = pl.cdiv(seq_len, tile_s)

    # ---- Host-precomputed constants (tiny: O(tile_s*D + n_tiles*D)) ---------
    # Built in float64 so odd columns carry true cos values (no sin(x+pi/2)
    # identity and its large-argument rounding concerns).
    col = np.arange(d_model)
    freq = np.exp((col // 2 * 2).astype(np.float64) * (-math.log(10000.0) / d_model))
    phase = np.where(col % 2 == 1, math.pi / 2.0, 0.0)               # (D,)

    r = np.arange(tile_s, dtype=np.float64)[:, None]                  # (tile_s, 1)
    lo_angle = r * freq[None, :] + phase[None, :]                     # (tile_s, D)
    sin_lo = jnp.asarray(np.sin(lo_angle), dtype=jnp.float32)
    cos_lo = jnp.asarray(np.cos(lo_angle), dtype=jnp.float32)

    bases = (np.arange(n_tiles, dtype=np.float64) * tile_s)[:, None]  # (n_tiles, 1)
    base_angle = bases * freq[None, :]                                # (n_tiles, D)
    base_sc = jnp.asarray(
        np.stack([np.sin(base_angle), np.cos(base_angle)], axis=1),   # (n_tiles, 2, D)
        dtype=jnp.float32,
    )

    # ---- Kernel launch: output emitted unpadded, edge tile masked -----------
    table = pl.pallas_call(
        _pos_emb_kernel,
        out_shape=jax.ShapeDtypeStruct((seq_len, d_model), out_dtype),
        grid_spec=pltpu.PrefetchScalarGridSpec(
            num_scalar_prefetch=0,
            grid=(n_tiles,),
            in_specs=[
                # per-tile base sin/cos: (2, D) block selected by grid index
                pl.BlockSpec((None, 2, d_model), lambda i: (i, 0, 0)),
                # resident lo tables: same block every step (full array dims)
                pl.BlockSpec((tile_s, d_model), lambda i: (0, 0)),
                pl.BlockSpec((tile_s, d_model), lambda i: (0, 0)),
            ],
            out_specs=pl.BlockSpec((tile_s, d_model), lambda i: (i, 0)),
        ),
        compiler_params=pltpu.CompilerParams(
            dimension_semantics=("parallel",),
            vmem_limit_bytes=32 * 1024 * 1024,
        ),
    )(base_sc, sin_lo, cos_lo)
    return table


class PositionEmbedding:
    """JAX/Pallas mirror of the PyTorch module: table built once in __init__."""

    def __init__(self, d_model: int, max_len: int = 5000, out_dtype=jnp.float32) -> None:
        self.d_model = d_model
        self.max_len = max_len
        # Input-independent: compute once, forward is a pure slice
        # (same structure as the torch module's precomputed buffer).
        self.encoding = _build_table(max_len, d_model, out_dtype)[None, :, :]  # (1, L, D)

    def __call__(self, x: jax.Array) -> jax.Array:
        return self.encoding[:, : x.shape[1], :]


def position_embedding(x: jax.Array, max_len: int = 5000) -> jax.Array:
    """Functional one-shot variant: returns (1, seq_len, d_model) f32.

    NOTE: re-traces/rebuilds per distinct (seq_len, d_model); prefer the class
    (build once at max_len, slice per forward) in real use.
    """
    _, seq_len, d_model = x.shape
    assert seq_len <= max_len
    return _build_table(seq_len, d_model)[None, :, :]


def _reference(seq_len: int, d_model: int) -> jnp.ndarray:
    pos = jnp.arange(seq_len, dtype=jnp.float32)[:, None]
    div = jnp.exp(
        jnp.arange(0, d_model, 2, dtype=jnp.float32)
        * (-math.log(10000.0) / d_model)
    )
    enc = jnp.zeros((seq_len, d_model), jnp.float32)
    enc = enc.at[:, 0::2].set(jnp.sin(pos * div))
    enc = enc.at[:, 1::2].set(jnp.cos(pos * div))
    return enc[None]


if __name__ == "__main__":
    key = jax.random.PRNGKey(0)
    batch, seq_len, d_model = 2, 8, 32
    x = jax.random.normal(key, (batch, seq_len, d_model), dtype=jnp.float32)

    # Module-style path: full max_len table built once, sliced per forward.
    pe = PositionEmbedding(d_model=d_model, max_len=5000)
    out = jax.block_until_ready(pe(x))

    # Functional one-shot path (exercises the small-shape / single-tile path).
    out2 = jax.block_until_ready(position_embedding(x))

    ref = _reference(seq_len, d_model)

    assert out.shape == (1, seq_len, d_model), out.shape
    assert out.dtype == jnp.float32
    assert jnp.allclose(out, ref, atol=1e-5, rtol=1e-5), (
        float(jnp.max(jnp.abs(out - ref)))
    )

    assert out2.shape == (1, seq_len, d_model), out2.shape
    assert out2.dtype == jnp.float32
    assert jnp.allclose(out2, ref, atol=1e-5, rtol=1e-5), (
        float(jnp.max(jnp.abs(out2 - ref)))
    )

    # Large-position / realistic-width check of the angle-addition identity
    # (positions up to 4999, d_model=256). Loose tolerance: the f32 reference
    # itself carries range-reduction error for sin/cos of arguments ~5e3.
    d_big, len_big = 256, 5000
    pe_big = PositionEmbedding(d_model=d_big, max_len=len_big)
    big = jax.block_until_ready(pe_big(jnp.zeros((1, len_big, d_big), jnp.float32)))
    ref_big = _reference(len_big, d_big)
    assert big.shape == (1, len_big, d_big), big.shape
    assert jnp.allclose(big, ref_big, atol=5e-3, rtol=0.0), (
        float(jnp.max(jnp.abs(big - ref_big)))
    )

    print("KERNEL_OK")
</pallas_src>

<mosaic_0001>
module attributes {stable_mosaic.version = 11 : i64} {
  func.func @_pos_emb_kernel(%arg0: i32, %arg1: memref<1x2x32xf32, #tpu.memory_space<vmem>>, %arg2: memref<2048x32xf32, #tpu.memory_space<vmem>>, %arg3: memref<2048x32xf32, #tpu.memory_space<vmem>>, %arg4: memref<2048x32xf32, #tpu.memory_space<vmem>>) attributes {dimension_semantics = [#tpu.dimension_semantics<parallel>], iteration_bounds = array<i64: 3>, scalar_prefetch = 0 : i64, scratch_operands = 0 : i64, tpu.core_type = #tpu.core_type<tc>, window_params = [{transform_indices = @transform_0, window_bounds = array<i64: 1, 2, 32>}, {pipeline_mode = #tpu.pipeline_mode<synchronous>, transform_indices = @transform_1, window_bounds = array<i64: 2048, 32>}, {pipeline_mode = #tpu.pipeline_mode<synchronous>, transform_indices = @transform_2, window_bounds = array<i64: 2048, 32>}, {transform_indices = @transform_3, window_bounds = array<i64: 2048, 32>}]} {
    %c0 = arith.constant 0 : index
    %c0_0 = arith.constant 0 : index
    %c0_1 = arith.constant 0 : index
    %0 = vector.load %arg1[%c0, %c0_0, %c0_1] : memref<1x2x32xf32, #tpu.memory_space<vmem>>, vector<1x1x32xf32>
    %1 = vector.shape_cast %0 : vector<1x1x32xf32> to vector<1x32xf32>
    %c0_2 = arith.constant 0 : index
    %c1 = arith.constant 1 : index
    %c0_3 = arith.constant 0 : index
    %2 = vector.load %arg1[%c0_2, %c1, %c0_3] : memref<1x2x32xf32, #tpu.memory_space<vmem>>, vector<1x1x32xf32>
    %3 = vector.shape_cast %2 : vector<1x1x32xf32> to vector<1x32xf32>
    %c0_4 = arith.constant 0 : index
    %c0_5 = arith.constant 0 : index
    %4 = vector.load %arg3[%c0_4, %c0_5] : memref<2048x32xf32, #tpu.memory_space<vmem>>, vector<2048x32xf32>
    %5 = vector.broadcast %1 : vector<1x32xf32> to vector<2048x32xf32>
    %6 = arith.mulf %5, %4 : vector<2048x32xf32>
    %c0_6 = arith.constant 0 : index
    %c0_7 = arith.constant 0 : index
    %7 = vector.load %arg2[%c0_6, %c0_7] : memref<2048x32xf32, #tpu.memory_space<vmem>>, vector<2048x32xf32>
    %8 = vector.broadcast %3 : vector<1x32xf32> to vector<2048x32xf32>
    %9 = arith.mulf %8, %7 : vector<2048x32xf32>
    %10 = arith.addf %6, %9 : vector<2048x32xf32>
    %c0_8 = arith.constant 0 : index
    %c0_9 = arith.constant 0 : index
    %11 = vector.load %arg4[%c0_8, %c0_9] : memref<2048x32xf32, #tpu.memory_space<vmem>>, vector<2048x32xf32>
    tpu.vector_store %arg4[%c0_8, %c0_9], %10 {strides = array<i32>} : memref<2048x32xf32, #tpu.memory_space<vmem>>, vector<2048x32xf32>,
    return
  }
  func.func @transform_0(%arg0: i32) -> (i32, i32, i32) {
    %c0_i32 = arith.constant 0 : i32
    %c0_i32_0 = arith.constant 0 : i32
    %c0_i32_1 = arith.constant 0 : i32
    return %arg0, %c0_i32, %c0_i32_0 : i32, i32, i32
  }
  func.func @transform_1(%arg0: i32) -> (i32, i32) {
    %c0_i32 = arith.constant 0 : i32
    %c0_i32_0 = arith.constant 0 : i32
    %c0_i32_1 = arith.constant 0 : i32
    return %c0_i32, %c0_i32_0 : i32, i32
  }
  func.func @transform_2(%arg0: i32) -> (i32, i32) {
    %c0_i32 = arith.constant 0 : i32
    %c0_i32_0 = arith.constant 0 : i32
    %c0_i32_1 = arith.constant 0 : i32
    return %c0_i32, %c0_i32_0 : i32, i32
  }
  func.func @transform_3(%arg0: i32) -> (i32, i32) {
    %c0_i32 = arith.constant 0 : i32
    %c0_i32_0 = arith.constant 0 : i32
    return %arg0, %c0_i32 : i32, i32
  }
}

</mosaic_0001>

<bundles_post_ra>
// kernel: tpu_custom_call.1
= control target key start
LH: loop header
LB: loop body
LE: loop exit
PB: predicated region body
PF: predicated region fallthrough
CT: control target
= control target key end

     0   :  { %s2410_s12 = smov 0   ;;  %s2412_s13 = smov 0   ;;  %s5232_s0 = inlined_call_operand.vmem [shape: f32[3,2,32], index: 0, kind: input, shape index: {}]   ;;  %s5233_s1 = inlined_call_operand.vmem [shape: f32[2048,32], index: 1, kind: input, shape index: {}]   ;;  %s5234_s2 = inlined_call_operand.vmem [shape: f32[2048,32], index: 2, kind: input, shape index: {}]   ;;  %s5235_s3 = inlined_call_operand.vmem [shape: f32[5000,32], index: 3, kind: output, shape index: {}]  }
   0x1   :  { %s2414_s14 = smov 0  }
   0x2 LB: > { %s2421_s15 = sadd.s32 4294967295, %s2356_s14   ;;  %s2423_s16 = sadd.s32 1, %s2356_s14   ;;  %s2356_s14 = sphi %s2414_s14, %s5244_s14   ;;  %s2352_s13 = sphi %s2412_s13, %s5243_s13   ;;  %s2348_s12 = sphi %s2410_s12, %s5242_s12  }
   0x3   : > { %s85_s17 = ssub.s32 %s2356_s14, %s2423_s16  ;;  %s88_s18 = sadd.s32 1, %s2352_s13 }
   0x4   : > { %p86_p0 = scmp.eq.s32.totalorder %s85_s17, 0  ;;  %p98_p1 = scmp.ne.s32.totalorder %s2352_s13, %s2348_s12 }
   0x5   : > { %p99_p2 = scmp.eq.s32.totalorder %s2421_s15, 2  ;;  %p2185_p3 = scmp.ge.s32.totalorder %s2356_s14, 1 }
   0x6   : > { %s2430_s19 = scalar_select %p86_p0, %s2352_s13, %s88_s18  }
   0x7   : > { %p2432_p4 = por %p99_p2, %p98_p1  ;;  %p136_p5 = scmp.lt.s32.totalorder %s2356_s14, 4 }
   0x9   : > { %p137_p6 = pnand %p2185_p3, %p136_p5 }
   0xa   : > { %p158_p7 = scmp.lt.s32.totalorder (!%p137_p6), %s2421_s15, 2  ;;  %s155_s21 = sand.u32 (!%p137_p6), 1, %s2348_s12  }
   0xb   : > { %140 = sbr.rel (%p137_p6) target bundleno = 293 (0x125), region = 32  ;;  %s2456_s9 = sshll.u32 (!%p137_p6), %s155_s21, 11 }
   0xc   : > { %s2527_s28 = scalar_lea.vmem (!%p137_p6), [#allocation2], %s2456_s9  }
  0x10   : > { %s159_s22 = scalar_select %p158_p7, %s2421_s15, 2  ;;  %v169_v0 = vld [vmem:[%s5234_s2] sm:$0xff]  ;;  %v170_v2 = vld [vmem:[%s5234_s2 + $0x8] sm:$0xff]  ;;  %v171_v4 = vld [vmem:[%s5234_s2 + $0x10] sm:$0xff]  ;;  %vm1457_vm0 = vcmask 261120  }
  0x11   : > { %v685_v1 = vld [vmem:[%s5233_s1] sm:$0xff]  ;;  %v686_v3 = vld [vmem:[%s5233_s1 + $0x8] sm:$0xff]  ;;  %v687_v5 = vld [vmem:[%s5233_s1 + $0x10] sm:$0xff]  ;;  %s2191_s8 = sshll.u32 (%p2432_p4), %s2421_s15, 8  ;;  %s2207_s10 = sshll.u32 (%p2432_p4), %s2421_s15, 11 }
  0x12   : > { %s2187_s29 = sshll.u32 %s159_s22, 1  ;;  %v172_v6 = vld [vmem:[%s5234_s2 + $0x18] sm:$0xff]  ;;  %v173_v8 = vld [vmem:[%s5234_s2 + $0x20] sm:$0xff]  ;;  %v174_v16 = vld [vmem:[%s5234_s2 + $0x28] sm:$0xff]  ;;  %s1722_s11 = ssub.s32 (%p2432_p4), 625, %s2191_s8 }
  0x13   : > { %s2461_s12 = scalar_lea.vmem %s5232_s0, %s2187_s29  ;;  %v688_v7 = vld [vmem:[%s5233_s1 + $0x18] sm:$0xff]  ;;  %v689_v11 = vld [vmem:[%s5233_s1 + $0x20] sm:$0xff]  ;;  %v690_v17 = vld [vmem:[%s5233_s1 + $0x28] sm:$0xff]  ;;  %p1723_p8 = scmp.lt.s32.totalorder (%p2432_p4), %s1722_s11, 256 }
  0x14   : > { %v2473_v9 = vld [vmem:[%s2461_s12] ss:$0 sm:$0xff]  ;;  %v2476_v10 = vld [vmem:[%s2461_s12 + $0x1] ss:$0 sm:$0xff]  ;;  %v175_v22 = vld [vmem:[%s5234_s2 + $0x30] sm:$0xff] }
  0x15   : > { %v429_v12 = vmul.f32 %v2473_v9, %v169_v0  ;;  %v945_v13 = vmul.f32 %v2476_v10, %v685_v1  ;;  %v430_v14 = vmul.f32 %v2473_v9, %v170_v2  ;;  %v946_v15 = vmul.f32 %v2476_v10, %v686_v3  ;;  %v691_v23 = vld [vmem:[%s5233_s1 + $0x30] sm:$0xff]  ;;  %v176_v24 = vld [vmem:[%s5234_s2 + $0x38] sm:$0xff]  ;;  %v177_v30 = vld [vmem:[%s5234_s2 + $0x40] sm:$0xff] }
  0x16   : > { %v431_v18 = vmul.f32 %v2473_v9, %v171_v4  ;;  %v947_v19 = vmul.f32 %v2476_v10, %v687_v5  ;;  %v432_v20 = vmul.f32 %v2473_v9, %v172_v6  ;;  %v948_v21 = vmul.f32 %v2476_v10, %v688_v7  ;;  %v692_v29 = vld [vmem:[%s5233_s1 + $0x38] sm:$0xff]  ;;  %v693_v31 = vld [vmem:[%s5233_s1 + $0x40] sm:$0xff]  ;;  %v178_v36 = vld [vmem:[%s5234_s2 + $0x48] sm:$0xff] }
  0x17   : > { %v1201_v25 = vadd.f32 %v945_v13, %v429_v12  ;;  %v1202_v26 = vadd.f32 %v946_v15, %v430_v14  ;;  %v433_v27 = vmul.f32 %v2473_v9, %v173_v8  ;;  %v949_v28 = vmul.f32 %v2476_v10, %v689_v11  ;;  %v694_v37 = vld [vmem:[%s5233_s1 + $0x48] sm:$0xff]  ;;  %v179_v38 = vld [vmem:[%s5234_s2 + $0x50] sm:$0xff]  ;;  %v180_v44 = vld [vmem:[%s5234_s2 + $0x58] sm:$0xff] }
  0x18   : > { %v1203_v32 = vadd.f32 %v947_v19, %v431_v18  ;;  %v1204_v33 = vadd.f32 %v948_v21, %v432_v20  ;;  %v434_v34 = vmul.f32 %v2473_v9, %v174_v16  ;;  %v950_v35 = vmul.f32 %v2476_v10, %v690_v17  ;;  %v695_v43 = vld [vmem:[%s5233_s1 + $0x50] sm:$0xff]  ;;  %v696_v49 = vld [vmem:[%s5233_s1 + $0x58] sm:$0xff]  ;;  %v181_v50 = vld [vmem:[%s5234_s2 + $0x60] sm:$0xff] }
  0x19   : > { %1458 = vst.msk [vmem:[%s2527_s28] sm:$0xff] %vm1457_vm0, %v1201_v25  ;;  %1459 = vst.msk [vmem:[%s2527_s28 + $0x8] sm:$0xff] %vm1457_vm0, %v1202_v26  ;;  %v1205_v39 = vadd.f32 %v949_v28, %v433_v27  ;;  %v435_v40 = vmul.f32 %v2473_v9, %v175_v22  ;;  %v951_v41 = vmul.f32 %v2476_v10, %v691_v23  ;;  %v697_v51 = vld [vmem:[%s5233_s1 + $0x60] sm:$0xff]  ;;  %v182_v56 = vld [vmem:[%s5234_s2 + $0x68] sm:$0xff] }
  0x1a   : > { %v436_v42 = vmul.f32 %v2473_v9, %v176_v24  ;;  %1460 = vst.msk [vmem:[%s2527_s28 + $0x10] sm:$0xff] %vm1457_vm0, %v1203_v32  ;;  %1461 = vst.msk [vmem:[%s2527_s28 + $0x18] sm:$0xff] %vm1457_vm0, %v1204_v33  ;;  %v1206_v45 = vadd.f32 %v950_v35, %v434_v34  ;;  %v952_v46 = vmul.f32 %v2476_v10, %v692_v29  ;;  %v698_v57 = vld [vmem:[%s5233_s1 + $0x68] sm:$0xff]  ;;  %v183_v58 = vld [vmem:[%s5234_s2 + $0x70] sm:$0xff] }
  0x1b   : > { %v437_v47 = vmul.f32 %v2473_v9, %v177_v30  ;;  %v953_v48 = vmul.f32 %v2476_v10, %v693_v31  ;;  %1462 = vst.msk [vmem:[%s2527_s28 + $0x20] sm:$0xff] %vm1457_vm0, %v1205_v39  ;;  %v1207_v52 = vadd.f32 %v951_v41, %v435_v40  ;;  %v438_v53 = vmul.f32 %v2473_v9, %v178_v36  ;;  %v699_v63 = vld [vmem:[%s5233_s1 + $0x70] sm:$0xff]  ;;  %v184_v0 = vld [vmem:[%s5234_s2 + $0x78] sm:$0xff]  ;;  %v185_v6 = vld [vmem:[%s5234_s2 + $0x80] sm:$0xff] }
  0x1c   : > { %v954_v54 = vmul.f32 %v2476_v10, %v694_v37  ;;  %v439_v55 = vmul.f32 %v2473_v9, %v179_v38  ;;  %1463 = vst.msk [vmem:[%s2527_s28 + $0x28] sm:$0xff] %vm1457_vm0, %v1206_v45  ;;  %v1208_v59 = vadd.f32 %v952_v46, %v436_v42  ;;  %v955_v61 = vmul.f32 %v2476_v10, %v695_v43  ;;  %v700_v5 = vld [vmem:[%s5233_s1 + $0x78] sm:$0xff]  ;;  %v701_v7 = vld [vmem:[%s5233_s1 + $0x80] sm:$0xff]  ;;  %v186_v14 = vld [vmem:[%s5234_s2 + $0x88] sm:$0xff] }
  0x1d   : > { %v1209_v60 = vadd.f32 %v953_v48, %v437_v47  ;;  %v440_v62 = vmul.f32 %v2473_v9, %v180_v44  ;;  %1464 = vst.msk [vmem:[%s2527_s28 + $0x30] sm:$0xff] %vm1457_vm0, %v1207_v52  ;;  %v956_v2 = vmul.f32 %v2476_v10, %v696_v49  ;;  %v441_v3 = vmul.f32 %v2473_v9, %v181_v50  ;;  %v702_v15 = vld [vmem:[%s5233_s1 + $0x88] sm:$0xff]  ;;  %v187_v16 = vld [vmem:[%s5234_s2 + $0x90] sm:$0xff]  ;;  %v188_v22 = vld [vmem:[%s5234_s2 + $0x98] sm:$0xff] }
  0x1e   : > { %v1210_v1 = vadd.f32 %v954_v54, %v438_v53  ;;  %v957_v4 = vmul.f32 %v2476_v10, %v697_v51  ;;  %1465 = vst.msk [vmem:[%s2527_s28 + $0x38] sm:$0xff] %vm1457_vm0, %v1208_v59  ;;  %v1211_v8 = vadd.f32 %v955_v61, %v439_v55  ;;  %v442_v11 = vmul.f32 %v2473_v9, %v182_v56  ;;  %v703_v21 = vld [vmem:[%s5233_s1 + $0x90] sm:$0xff]  ;;  %v704_v27 = vld [vmem:[%s5233_s1 + $0x98] sm:$0xff]  ;;  %v189_v28 = vld [vmem:[%s5234_s2 + $0xa0] sm:$0xff] }
  0x1f   : > { %1466 = vst.msk [vmem:[%s2527_s28 + $0x40] sm:$0xff] %vm1457_vm0, %v1209_v60  ;;  %v958_v12 = vmul.f32 %v2476_v10, %v698_v57  ;;  %v443_v13 = vmul.f32 %v2473_v9, %v183_v58  ;;  %v1212_v17 = vadd.f32 %v956_v2, %v440_v62  ;;  %v959_v19 = vmul.f32 %v2476_v10, %v699_v63  ;;  %v705_v29 = vld [vmem:[%s5233_s1 + $0xa0] sm:$0xff]  ;;  %v190_v34 = vld [vmem:[%s5234_s2 + $0xa8] sm:$0xff]  ;;  %v191_v36 = vld [vmem:[%s5234_s2 + $0xb0] sm:$0xff] }
  0x20   : > { %1467 = vst.msk [vmem:[%s2527_s28 + $0x48] sm:$0xff] %vm1457_vm0, %v1210_v1  ;;  %v1213_v18 = vadd.f32 %v957_v4, %v441_v3  ;;  %v444_v20 = vmul.f32 %v2473_v9, %v184_v0  ;;  %1468 = vst.msk [vmem:[%s2527_s28 + $0x50] sm:$0xff] %vm1457_vm0, %v1211_v8  ;;  %v960_v24 = vmul.f32 %v2476_v10, %v700_v5  ;;  %v706_v35 = vld [vmem:[%s5233_s1 + $0xa8] sm:$0xff]  ;;  %v707_v41 = vld [vmem:[%s5233_s1 + $0xb0] sm:$0xff] }
  0x21   : > { %v1214_v23 = vadd.f32 %v958_v12, %v442_v11  ;;  %v445_v25 = vmul.f32 %v2473_v9, %v185_v6  ;;  %v961_v26 = vmul.f32 %v2476_v10, %v701_v7  ;;  %1469 = vst.msk [vmem:[%s2527_s28 + $0x58] sm:$0xff] %vm1457_vm0, %v1212_v17  ;;  %v1215_v30 = vadd.f32 %v959_v19, %v443_v13  ;;  %v192_v42 = vld [vmem:[%s5234_s2 + $0xb8] sm:$0xff]  ;;  %v193_v48 = vld [vmem:[%s5234_s2 + $0xc0] sm:$0xff]  ;;  %v194_v54 = vld [vmem:[%s5234_s2 + $0xc8] sm:$0xff] }
  0x22   : > { %1470 = vst.msk [vmem:[%s2527_s28 + $0x60] sm:$0xff] %vm1457_vm0, %v1213_v18  ;;  %v446_v31 = vmul.f32 %v2473_v9, %v186_v14  ;;  %v962_v32 = vmul.f32 %v2476_v10, %v702_v15  ;;  %v447_v33 = vmul.f32 %v2473_v9, %v187_v16  ;;  %v1216_v37 = vadd.f32 %v960_v24, %v444_v20  ;;  %v708_v47 = vld [vmem:[%s5233_s1 + $0xb8] sm:$0xff]  ;;  %v709_v49 = vld [vmem:[%s5233_s1 + $0xc0] sm:$0xff]  ;;  %v710_v55 = vld [vmem:[%s5233_s1 + $0xc8] sm:$0xff] }
  0x23   : > { %1471 = vst.msk [vmem:[%s2527_s28 + $0x68] sm:$0xff] %vm1457_vm0, %v1214_v23  ;;  %v1217_v38 = vadd.f32 %v961_v26, %v445_v25  ;;  %v963_v39 = vmul.f32 %v2476_v10, %v703_v21  ;;  %v448_v40 = vmul.f32 %v2473_v9, %v188_v22  ;;  %1472 = vst.msk [vmem:[%s2527_s28 + $0x70] sm:$0xff] %vm1457_vm0, %v1215_v30  ;;  %v195_v56 = vld [vmem:[%s5234_s2 + $0xd0] sm:$0xff]  ;;  %v196_v62 = vld [vmem:[%s5234_s2 + $0xd8] sm:$0xff] }
  0x24   : > { %v1218_v43 = vadd.f32 %v962_v32, %v446_v31  ;;  %v964_v44 = vmul.f32 %v2476_v10, %v704_v27  ;;  %v449_v45 = vmul.f32 %v2473_v9, %v189_v28  ;;  %v965_v46 = vmul.f32 %v2476_v10, %v705_v29  ;;  %1473 = vst.msk [vmem:[%s2527_s28 + $0x78] sm:$0xff] %vm1457_vm0, %v1216_v37  ;;  %v711_v61 = vld [vmem:[%s5233_s1 + $0xd0] sm:$0xff]  ;;  %v712_v3 = vld [vmem:[%s5233_s1 + $0xd8] sm:$0xff]  ;;  %v197_v4 = vld [vmem:[%s5234_s2 + $0xe0] sm:$0xff] }
  0x25   : > { %1474 = vst.msk [vmem:[%s2527_s28 + $0x80] sm:$0xff] %vm1457_vm0, %v1217_v38  ;;  %v1219_v50 = vadd.f32 %v963_v39, %v447_v33  ;;  %v450_v51 = vmul.f32 %v2473_v9, %v190_v34  ;;  %v966_v52 = vmul.f32 %v2476_v10, %v706_v35  ;;  %v451_v53 = vmul.f32 %v2473_v9, %v191_v36  ;;  %v713_v5 = vld [vmem:[%s5233_s1 + $0xe0] sm:$0xff]  ;;  %v198_v12 = vld [vmem:[%s5234_s2 + $0xe8] sm:$0xff]  ;;  %v199_v14 = vld [vmem:[%s5234_s2 + $0xf0] sm:$0xff] }
  0x26   : > { %1475 = vst.msk [vmem:[%s2527_s28 + $0x88] sm:$0xff] %vm1457_vm0, %v1218_v43  ;;  %v1220_v57 = vadd.f32 %v964_v44, %v448_v40  ;;  %v1221_v58 = vadd.f32 %v965_v46, %v449_v45  ;;  %v967_v59 = vmul.f32 %v2476_v10, %v707_v41  ;;  %v452_v60 = vmul.f32 %v2473_v9, %v192_v42  ;;  %v714_v13 = vld [vmem:[%s5233_s1 + $0xe8] sm:$0xff]  ;;  %v715_v19 = vld [vmem:[%s5233_s1 + $0xf0] sm:$0xff]  ;;  %v200_v20 = vld [vmem:[%s5234_s2 + $0xf8] sm:$0xff] }
  0x27   : > { %1476 = vst.msk [vmem:[%s2527_s28 + $0x90] sm:$0xff] %vm1457_vm0, %v1219_v50  ;;  %v1222_v63 = vadd.f32 %v966_v52, %v450_v51  ;;  %v968_v0 = vmul.f32 %v2476_v10, %v708_v47  ;;  %v453_v1 = vmul.f32 %v2473_v9, %v193_v48  ;;  %v969_v2 = vmul.f32 %v2476_v10, %v709_v49  ;;  %v716_v25 = vld [vmem:[%s5233_s1 + $0xf8] sm:$0xff]  ;;  %v201_v26 = vld [vmem:[%s5234_s2 + $0x100] sm:$0xff]  ;;  %v202_v32 = vld [vmem:[%s5234_s2 + $0x108] sm:$0xff] }
  0x28   : > { %1477 = vst.msk [vmem:[%s2527_s28 + $0x98] sm:$0xff] %vm1457_vm0, %v1220_v57  ;;  %1478 = vst.msk [vmem:[%s2527_s28 + $0xa0] sm:$0xff] %vm1457_vm0, %v1221_v58  ;;  %v1223_v6 = vadd.f32 %v967_v59, %v451_v53  ;;  %v454_v7 = vmul.f32 %v2473_v9, %v194_v54  ;;  %v970_v8 = vmul.f32 %v2476_v10, %v710_v55  ;;  %v717_v27 = vld [vmem:[%s5233_s1 + $0x100] sm:$0xff]  ;;  %v718_v33 = vld [vmem:[%s5233_s1 + $0x108] sm:$0xff] }
  0x29   : > { %v455_v11 = vmul.f32 %v2473_v9, %v195_v56  ;;  %1479 = vst.msk [vmem:[%s2527_s28 + $0xa8] sm:$0xff] %vm1457_vm0, %v1222_v63  ;;  %v1224_v15 = vadd.f32 %v968_v0, %v452_v60  ;;  %v1225_v16 = vadd.f32 %v969_v2, %v453_v1  ;;  %v971_v17 = vmul.f32 %v2476_v10, %v711_v61  ;;  %v203_v34 = vld [vmem:[%s5234_s2 + $0x110] sm:$0xff]  ;;  %v204_v40 = vld [vmem:[%s5234_s2 + $0x118] sm:$0xff]  ;;  %v205_v46 = vld [vmem:[%s5234_s2 + $0x120] sm:$0xff] }
  0x2a   : > { %v456_v18 = vmul.f32 %v2473_v9, %v196_v62  ;;  %1480 = vst.msk [vmem:[%s2527_s28 + $0xb0] sm:$0xff] %vm1457_vm0, %v1223_v6  ;;  %v1226_v21 = vadd.f32 %v970_v8, %v454_v7  ;;  %v972_v22 = vmul.f32 %v2476_v10, %v712_v3  ;;  %v457_v23 = vmul.f32 %v2473_v9, %v197_v4  ;;  %v719_v39 = vld [vmem:[%s5233_s1 + $0x110] sm:$0xff]  ;;  %v720_v45 = vld [vmem:[%s5233_s1 + $0x118] sm:$0xff]  ;;  %v721_v47 = vld [vmem:[%s5233_s1 + $0x120] sm:$0xff] }
  0x2b   : > { %v973_v24 = vmul.f32 %v2476_v10, %v713_v5  ;;  %1481 = vst.msk [vmem:[%s2527_s28 + $0xb8] sm:$0xff] %vm1457_vm0, %v1224_v15  ;;  %1482 = vst.msk [vmem:[%s2527_s28 + $0xc0] sm:$0xff] %vm1457_vm0, %v1225_v16  ;;  %v1227_v28 = vadd.f32 %v971_v17, %v455_v11  ;;  %v458_v29 = vmul.f32 %v2473_v9, %v198_v12  ;;  %v206_v52 = vld [vmem:[%s5234_s2 + $0x128] sm:$0xff]  ;;  %v207_v54 = vld [vmem:[%s5234_s2 + $0x130] sm:$0xff] }
  0x2c   : > { %v974_v30 = vmul.f32 %v2476_v10, %v714_v13  ;;  %v459_v31 = vmul.f32 %v2473_v9, %v199_v14  ;;  %1483 = vst.msk [vmem:[%s2527_s28 + $0xc8] sm:$0xff] %vm1457_vm0, %v1226_v21  ;;  %v1228_v35 = vadd.f32 %v972_v22, %v456_v18  ;;  %v975_v37 = vmul.f32 %v2476_v10, %v715_v19  ;;  %v722_v53 = vld [vmem:[%s5233_s1 + $0x128] sm:$0xff]  ;;  %v723_v59 = vld [vmem:[%s5233_s1 + $0x130] sm:$0xff]  ;;  %v208_v60 = vld [vmem:[%s5234_s2 + $0x138] sm:$0xff] }
  0x2d   : > { %v1229_v36 = vadd.f32 %v973_v24, %v457_v23  ;;  %v460_v38 = vmul.f32 %v2473_v9, %v200_v20  ;;  %1484 = vst.msk [vmem:[%s2527_s28 + $0xd0] sm:$0xff] %vm1457_vm0, %v1227_v28  ;;  %v976_v42 = vmul.f32 %v2476_v10, %v716_v25  ;;  %v461_v43 = vmul.f32 %v2473_v9, %v201_v26  ;;  %v724_v1 = vld [vmem:[%s5233_s1 + $0x138] sm:$0xff]  ;;  %v209_v2 = vld [vmem:[%s5234_s2 + $0x140] sm:$0xff]  ;;  %v210_v8 = vld [vmem:[%s5234_s2 + $0x148] sm:$0xff] }
  0x2e   : > { %v1230_v41 = vadd.f32 %v974_v30, %v458_v29  ;;  %v977_v44 = vmul.f32 %v2476_v10, %v717_v27  ;;  %1485 = vst.msk [vmem:[%s2527_s28 + $0xd8] sm:$0xff] %vm1457_vm0, %v1228_v35  ;;  %v1231_v48 = vadd.f32 %v975_v37, %v459_v31  ;;  %v462_v49 = vmul.f32 %v2473_v9, %v202_v32  ;;  %v725_v3 = vld [vmem:[%s5233_s1 + $0x140] sm:$0xff]  ;;  %v726_v11 = vld [vmem:[%s5233_s1 + $0x148] sm:$0xff]  ;;  %v211_v12 = vld [vmem:[%s5234_s2 + $0x150] sm:$0xff] }
  0x2f   : > { %1486 = vst.msk [vmem:[%s2527_s28 + $0xe0] sm:$0xff] %vm1457_vm0, %v1229_v36  ;;  %v978_v50 = vmul.f32 %v2476_v10, %v718_v33  ;;  %v463_v51 = vmul.f32 %v2473_v9, %v203_v34  ;;  %v1232_v55 = vadd.f32 %v976_v42, %v460_v38  ;;  %v979_v57 = vmul.f32 %v2476_v10, %v719_v39  ;;  %v727_v17 = vld [vmem:[%s5233_s1 + $0x150] sm:$0xff]  ;;  %v212_v18 = vld [vmem:[%s5234_s2 + $0x158] sm:$0xff]  ;;  %v213_v24 = vld [vmem:[%s5234_s2 + $0x160] sm:$0xff] }
  0x30   : > { %1487 = vst.msk [vmem:[%s2527_s28 + $0xe8] sm:$0xff] %vm1457_vm0, %v1230_v41  ;;  %v1233_v56 = vadd.f32 %v977_v44, %v461_v43  ;;  %v464_v58 = vmul.f32 %v2473_v9, %v204_v40  ;;  %1488 = vst.msk [vmem:[%s2527_s28 + $0xf0] sm:$0xff] %vm1457_vm0, %v1231_v48  ;;  %v980_v62 = vmul.f32 %v2476_v10, %v720_v45  ;;  %v728_v23 = vld [vmem:[%s5233_s1 + $0x158] sm:$0xff]  ;;  %v729_v25 = vld [vmem:[%s5233_s1 + $0x160] sm:$0xff] }
  0x31   : > { %v1234_v61 = vadd.f32 %v978_v50, %v462_v49  ;;  %v465_v63 = vmul.f32 %v2473_v9, %v205_v46  ;;  %v981_v0 = vmul.f32 %v2476_v10, %v721_v47  ;;  %1489 = vst.msk [vmem:[%s2527_s28 + $0xf8] sm:$0xff] %vm1457_vm0, %v1232_v55  ;;  %v1235_v4 = vadd.f32 %v979_v57, %v463_v51  ;;  %v214_v30 = vld [vmem:[%s5234_s2 + $0x168] sm:$0xff]  ;;  %v215_v32 = vld [vmem:[%s5234_s2 + $0x170] sm:$0xff]  ;;  %v216_v38 = vld [vmem:[%s5234_s2 + $0x178] sm:$0xff] }
  0x32   : > { %1490 = vst.msk [vmem:[%s2527_s28 + $0x100] sm:$0xff] %vm1457_vm0, %v1233_v56  ;;  %v466_v5 = vmul.f32 %v2473_v9, %v206_v52  ;;  %v982_v6 = vmul.f32 %v2476_v10, %v722_v53  ;;  %v467_v7 = vmul.f32 %v2473_v9, %v207_v54  ;;  %v1236_v13 = vadd.f32 %v980_v62, %v464_v58  ;;  %v730_v31 = vld [vmem:[%s5233_s1 + $0x168] sm:$0xff]  ;;  %v731_v37 = vld [vmem:[%s5233_s1 + $0x170] sm:$0xff]  ;;  %v732_v43 = vld [vmem:[%s5233_s1 + $0x178] sm:$0xff] }
  0x33   : > { %1491 = vst.msk [vmem:[%s2527_s28 + $0x108] sm:$0xff] %vm1457_vm0, %v1234_v61  ;;  %v1237_v14 = vadd.f32 %v981_v0, %v465_v63  ;;  %v983_v15 = vmul.f32 %v2476_v10, %v723_v59  ;;  %v468_v16 = vmul.f32 %v2473_v9, %v208_v60  ;;  %1492 = vst.msk [vmem:[%s2527_s28 + $0x110] sm:$0xff] %vm1457_vm0, %v1235_v4  ;;  %v217_v44 = vld [vmem:[%s5234_s2 + $0x180] sm:$0xff]  ;;  %v218_v50 = vld [vmem:[%s5234_s2 + $0x188] sm:$0xff] }
  0x34   : > { %v1238_v19 = vadd.f32 %v982_v6, %v466_v5  ;;  %v984_v20 = vmul.f32 %v2476_v10, %v724_v1  ;;  %v469_v21 = vmul.f32 %v2473_v9, %v209_v2  ;;  %v985_v22 = vmul.f32 %v2476_v10, %v725_v3  ;;  %1493 = vst.msk [vmem:[%s2527_s28 + $0x118] sm:$0xff] %vm1457_vm0, %v1236_v13  ;;  %v733_v45 = vld [vmem:[%s5233_s1 + $0x180] sm:$0xff]  ;;  %v734_v51 = vld [vmem:[%s5233_s1 + $0x188] sm:$0xff]  ;;  %v219_v52 = vld [vmem:[%s5234_s2 + $0x190] sm:$0xff] }
  0x35   : > { %1494 = vst.msk [vmem:[%s2527_s28 + $0x120] sm:$0xff] %vm1457_vm0, %v1237_v14  ;;  %v1239_v26 = vadd.f32 %v983_v15, %v467_v7  ;;  %v470_v27 = vmul.f32 %v2473_v9, %v210_v8  ;;  %v986_v28 = vmul.f32 %v2476_v10, %v726_v11  ;;  %v471_v29 = vmul.f32 %v2473_v9, %v211_v12  ;;  %v735_v57 = vld [vmem:[%s5233_s1 + $0x190] sm:$0xff]  ;;  %v220_v58 = vld [vmem:[%s5234_s2 + $0x198] sm:$0xff]  ;;  %v221_v0 = vld [vmem:[%s5234_s2 + $0x1a0] sm:$0xff] }
  0x36   : > { %1495 = vst.msk [vmem:[%s2527_s28 + $0x128] sm:$0xff] %vm1457_vm0, %v1238_v19  ;;  %v1240_v33 = vadd.f32 %v984_v20, %v468_v16  ;;  %v1241_v34 = vadd.f32 %v985_v22, %v469_v21  ;;  %v987_v35 = vmul.f32 %v2476_v10, %v727_v17  ;;  %v472_v36 = vmul.f32 %v2473_v9, %v212_v18  ;;  %v736_v63 = vld [vmem:[%s5233_s1 + $0x198] sm:$0xff]  ;;  %v737_v1 = vld [vmem:[%s5233_s1 + $0x1a0] sm:$0xff]  ;;  %v222_v6 = vld [vmem:[%s5234_s2 + $0x1a8] sm:$0xff] }
  0x37   : > { %1496 = vst.msk [vmem:[%s2527_s28 + $0x130] sm:$0xff] %vm1457_vm0, %v1239_v26  ;;  %v1242_v39 = vadd.f32 %v986_v28, %v470_v27  ;;  %v988_v40 = vmul.f32 %v2476_v10, %v728_v23  ;;  %v473_v41 = vmul.f32 %v2473_v9, %v213_v24  ;;  %v989_v42 = vmul.f32 %v2476_v10, %v729_v25  ;;  %v738_v7 = vld [vmem:[%s5233_s1 + $0x1a8] sm:$0xff]  ;;  %v223_v8 = vld [vmem:[%s5234_s2 + $0x1b0] sm:$0xff]  ;;  %v224_v16 = vld [vmem:[%s5234_s2 + $0x1b8] sm:$0xff] }
  0x38   : > { %1497 = vst.msk [vmem:[%s2527_s28 + $0x138] sm:$0xff] %vm1457_vm0, %v1240_v33  ;;  %1498 = vst.msk [vmem:[%s2527_s28 + $0x140] sm:$0xff] %vm1457_vm0, %v1241_v34  ;;  %v1243_v46 = vadd.f32 %v987_v35, %v471_v29  ;;  %v474_v47 = vmul.f32 %v2473_v9, %v214_v30  ;;  %v990_v48 = vmul.f32 %v2476_v10, %v730_v31  ;;  %v739_v15 = vld [vmem:[%s5233_s1 + $0x1b0] sm:$0xff]  ;;  %v740_v21 = vld [vmem:[%s5233_s1 + $0x1b8] sm:$0xff] }
  0x39   : > { %v475_v49 = vmul.f32 %v2473_v9, %v215_v32  ;;  %1499 = vst.msk [vmem:[%s2527_s28 + $0x148] sm:$0xff] %vm1457_vm0, %v1242_v39  ;;  %v1244_v53 = vadd.f32 %v988_v40, %v472_v36  ;;  %v1245_v54 = vadd.f32 %v989_v42, %v473_v41  ;;  %v991_v55 = vmul.f32 %v2476_v10, %v731_v37  ;;  %v225_v22 = vld [vmem:[%s5234_s2 + $0x1c0] sm:$0xff]  ;;  %v226_v28 = vld [vmem:[%s5234_s2 + $0x1c8] sm:$0xff]  ;;  %v227_v30 = vld [vmem:[%s5234_s2 + $0x1d0] sm:$0xff] }
  0x3a   : > { %v476_v56 = vmul.f32 %v2473_v9, %v216_v38  ;;  %1500 = vst.msk [vmem:[%s2527_s28 + $0x150] sm:$0xff] %vm1457_vm0, %v1243_v46  ;;  %v1246_v59 = vadd.f32 %v990_v48, %v474_v47  ;;  %v992_v60 = vmul.f32 %v2476_v10, %v732_v43  ;;  %v477_v61 = vmul.f32 %v2473_v9, %v217_v44  ;;  %v741_v23 = vld [vmem:[%s5233_s1 + $0x1c0] sm:$0xff]  ;;  %v742_v29 = vld [vmem:[%s5233_s1 + $0x1c8] sm:$0xff]  ;;  %v743_v35 = vld [vmem:[%s5233_s1 + $0x1d0] sm:$0xff] }
  0x3b   : > { %v993_v62 = vmul.f32 %v2476_v10, %v733_v45  ;;  %1501 = vst.msk [vmem:[%s2527_s28 + $0x158] sm:$0xff] %vm1457_vm0, %v1244_v53  ;;  %1502 = vst.msk [vmem:[%s2527_s28 + $0x160] sm:$0xff] %vm1457_vm0, %v1245_v54  ;;  %v1247_v2 = vadd.f32 %v991_v55, %v475_v49  ;;  %v478_v3 = vmul.f32 %v2473_v9, %v218_v50  ;;  %v228_v36 = vld [vmem:[%s5234_s2 + $0x1d8] sm:$0xff]  ;;  %v229_v42 = vld [vmem:[%s5234_s2 + $0x1e0] sm:$0xff] }
  0x3c   : > { %v994_v4 = vmul.f32 %v2476_v10, %v734_v51  ;;  %v479_v5 = vmul.f32 %v2473_v9, %v219_v52  ;;  %1503 = vst.msk [vmem:[%s2527_s28 + $0x168] sm:$0xff] %vm1457_vm0, %v1246_v59  ;;  %v1248_v11 = vadd.f32 %v992_v60, %v476_v56  ;;  %v995_v13 = vmul.f32 %v2476_v10, %v735_v57  ;;  %v744_v41 = vld [vmem:[%s5233_s1 + $0x1d8] sm:$0xff]  ;;  %v745_v43 = vld [vmem:[%s5233_s1 + $0x1e0] sm:$0xff]  ;;  %v230_v48 = vld [vmem:[%s5234_s2 + $0x1e8] sm:$0xff] }
  0x3d   : > { %v1249_v12 = vadd.f32 %v993_v62, %v477_v61  ;;  %v480_v14 = vmul.f32 %v2473_v9, %v220_v58  ;;  %1504 = vst.msk [vmem:[%s2527_s28 + $0x170] sm:$0xff] %vm1457_vm0, %v1247_v2  ;;  %v996_v18 = vmul.f32 %v2476_v10, %v736_v63  ;;  %v481_v19 = vmul.f32 %v2473_v9, %v221_v0  ;;  %v746_v49 = vld [vmem:[%s5233_s1 + $0x1e8] sm:$0xff]  ;;  %v231_v50 = vld [vmem:[%s5234_s2 + $0x1f0] sm:$0xff]  ;;  %v232_v56 = vld [vmem:[%s5234_s2 + $0x1f8] sm:$0xff] }
  0x3e   : > { %v1250_v17 = vadd.f32 %v994_v4, %v478_v3  ;;  %v997_v20 = vmul.f32 %v2476_v10, %v737_v1  ;;  %1505 = vst.msk [vmem:[%s2527_s28 + $0x178] sm:$0xff] %vm1457_vm0, %v1248_v11  ;;  %v1251_v24 = vadd.f32 %v995_v13, %v479_v5  ;;  %v482_v25 = vmul.f32 %v2473_v9, %v222_v6  ;;  %v747_v55 = vld [vmem:[%s5233_s1 + $0x1f0] sm:$0xff]  ;;  %v748_v61 = vld [vmem:[%s5233_s1 + $0x1f8] sm:$0xff]  ;;  %v233_v62 = vld [vmem:[%s5234_s2 + $0x200] sm:$0xff] }
  0x3f   : > { %1506 = vst.msk [vmem:[%s2527_s28 + $0x180] sm:$0xff] %vm1457_vm0, %v1249_v12  ;;  %v998_v26 = vmul.f32 %v2476_v10, %v738_v7  ;;  %v483_v27 = vmul.f32 %v2473_v9, %v223_v8  ;;  %v1252_v31 = vadd.f32 %v996_v18, %v480_v14  ;;  %v999_v33 = vmul.f32 %v2476_v10, %v739_v15  ;;  %v749_v63 = vld [vmem:[%s5233_s1 + $0x200] sm:$0xff]  ;;  %v234_v4 = vld [vmem:[%s5234_s2 + $0x208] sm:$0xff]  ;;  %v235_v6 = vld [vmem:[%s5234_s2 + $0x210] sm:$0xff] }
  0x40   : > { %1507 = vst.msk [vmem:[%s2527_s28 + $0x188] sm:$0xff] %vm1457_vm0, %v1250_v17  ;;  %v1253_v32 = vadd.f32 %v997_v20, %v481_v19  ;;  %v484_v34 = vmul.f32 %v2473_v9, %v224_v16  ;;  %1508 = vst.msk [vmem:[%s2527_s28 + $0x190] sm:$0xff] %vm1457_vm0, %v1251_v24  ;;  %v1000_v38 = vmul.f32 %v2476_v10, %v740_v21  ;;  %v750_v5 = vld [vmem:[%s5233_s1 + $0x208] sm:$0xff]  ;;  %v751_v13 = vld [vmem:[%s5233_s1 + $0x210] sm:$0xff] }
  0x41   : > { %v1254_v37 = vadd.f32 %v998_v26, %v482_v25  ;;  %v485_v39 = vmul.f32 %v2473_v9, %v225_v22  ;;  %v1001_v40 = vmul.f32 %v2476_v10, %v741_v23  ;;  %1509 = vst.msk [vmem:[%s2527_s28 + $0x198] sm:$0xff] %vm1457_vm0, %v1252_v31  ;;  %v1255_v44 = vadd.f32 %v999_v33, %v483_v27  ;;  %v236_v14 = vld [vmem:[%s5234_s2 + $0x218] sm:$0xff]  ;;  %v237_v20 = vld [vmem:[%s5234_s2 + $0x220] sm:$0xff]  ;;  %v238_v26 = vld [vmem:[%s5234_s2 + $0x228] sm:$0xff] }
  0x42   : > { %1510 = vst.msk [vmem:[%s2527_s28 + $0x1a0] sm:$0xff] %vm1457_vm0, %v1253_v32  ;;  %v486_v45 = vmul.f32 %v2473_v9, %v226_v28  ;;  %v1002_v46 = vmul.f32 %v2476_v10, %v742_v29  ;;  %v487_v47 = vmul.f32 %v2473_v9, %v227_v30  ;;  %v1256_v51 = vadd.f32 %v1000_v38, %v484_v34  ;;  %v752_v19 = vld [vmem:[%s5233_s1 + $0x218] sm:$0xff]  ;;  %v753_v21 = vld [vmem:[%s5233_s1 + $0x220] sm:$0xff]  ;;  %v754_v27 = vld [vmem:[%s5233_s1 + $0x228] sm:$0xff] }
  0x43   : > { %1511 = vst.msk [vmem:[%s2527_s28 + $0x1a8] sm:$0xff] %vm1457_vm0, %v1254_v37  ;;  %v1257_v52 = vadd.f32 %v1001_v40, %v485_v39  ;;  %v1003_v53 = vmul.f32 %v2476_v10, %v743_v35  ;;  %v488_v54 = vmul.f32 %v2473_v9, %v228_v36  ;;  %1512 = vst.msk [vmem:[%s2527_s28 + $0x1b0] sm:$0xff] %vm1457_vm0, %v1255_v44  ;;  %v239_v28 = vld [vmem:[%s5234_s2 + $0x230] sm:$0xff]  ;;  %v240_v34 = vld [vmem:[%s5234_s2 + $0x238] sm:$0xff] }
  0x44   : > { %v1258_v57 = vadd.f32 %v1002_v46, %v486_v45  ;;  %v1004_v58 = vmul.f32 %v2476_v10, %v744_v41  ;;  %v489_v59 = vmul.f32 %v2473_v9, %v229_v42  ;;  %v1005_v60 = vmul.f32 %v2476_v10, %v745_v43  ;;  %1513 = vst.msk [vmem:[%s2527_s28 + $0x1b8] sm:$0xff] %vm1457_vm0, %v1256_v51  ;;  %v755_v33 = vld [vmem:[%s5233_s1 + $0x230] sm:$0xff]  ;;  %v756_v39 = vld [vmem:[%s5233_s1 + $0x238] sm:$0xff]  ;;  %v241_v40 = vld [vmem:[%s5234_s2 + $0x240] sm:$0xff] }
  0x45   : > { %1514 = vst.msk [vmem:[%s2527_s28 + $0x1c0] sm:$0xff] %vm1457_vm0, %v1257_v52  ;;  %v1259_v0 = vadd.f32 %v1003_v53, %v487_v47  ;;  %v490_v1 = vmul.f32 %v2473_v9, %v230_v48  ;;  %v1006_v2 = vmul.f32 %v2476_v10, %v746_v49  ;;  %v491_v3 = vmul.f32 %v2473_v9, %v231_v50  ;;  %v757_v41 = vld [vmem:[%s5233_s1 + $0x240] sm:$0xff]  ;;  %v242_v46 = vld [vmem:[%s5234_s2 + $0x248] sm:$0xff]  ;;  %v243_v48 = vld [vmem:[%s5234_s2 + $0x250] sm:$0xff] }
  0x46   : > { %1515 = vst.msk [vmem:[%s2527_s28 + $0x1c8] sm:$0xff] %vm1457_vm0, %v1258_v57  ;;  %v1260_v7 = vadd.f32 %v1004_v58, %v488_v54  ;;  %v1261_v8 = vadd.f32 %v1005_v60, %v489_v59  ;;  %v1007_v11 = vmul.f32 %v2476_v10, %v747_v55  ;;  %v492_v12 = vmul.f32 %v2473_v9, %v232_v56  ;;  %v758_v47 = vld [vmem:[%s5233_s1 + $0x248] sm:$0xff]  ;;  %v759_v53 = vld [vmem:[%s5233_s1 + $0x250] sm:$0xff]  ;;  %v244_v54 = vld [vmem:[%s5234_s2 + $0x258] sm:$0xff] }
  0x47   : > { %1516 = vst.msk [vmem:[%s2527_s28 + $0x1d0] sm:$0xff] %vm1457_vm0, %v1259_v0  ;;  %v1262_v15 = vadd.f32 %v1006_v2, %v490_v1  ;;  %v1008_v16 = vmul.f32 %v2476_v10, %v748_v61  ;;  %v493_v17 = vmul.f32 %v2473_v9, %v233_v62  ;;  %v1009_v18 = vmul.f32 %v2476_v10, %v749_v63  ;;  %v760_v59 = vld [vmem:[%s5233_s1 + $0x258] sm:$0xff]  ;;  %v245_v60 = vld [vmem:[%s5234_s2 + $0x260] sm:$0xff]  ;;  %v246_v2 = vld [vmem:[%s5234_s2 + $0x268] sm:$0xff] }
  0x48   : > { %1517 = vst.msk [vmem:[%s2527_s28 + $0x1d8] sm:$0xff] %vm1457_vm0, %v1260_v7  ;;  %1518 = vst.msk [vmem:[%s2527_s28 + $0x1e0] sm:$0xff] %vm1457_vm0, %v1261_v8  ;;  %v1263_v22 = vadd.f32 %v1007_v11, %v491_v3  ;;  %v494_v23 = vmul.f32 %v2473_v9, %v234_v4  ;;  %v1010_v24 = vmul.f32 %v2476_v10, %v750_v5  ;;  %v761_v61 = vld [vmem:[%s5233_s1 + $0x260] sm:$0xff]  ;;  %v762_v3 = vld [vmem:[%s5233_s1 + $0x268] sm:$0xff] }
  0x49   : > { %v495_v25 = vmul.f32 %v2473_v9, %v235_v6  ;;  %1519 = vst.msk [vmem:[%s2527_s28 + $0x1e8] sm:$0xff] %vm1457_vm0, %v1262_v15  ;;  %v1264_v29 = vadd.f32 %v1008_v16, %v492_v12  ;;  %v1265_v30 = vadd.f32 %v1009_v18, %v493_v17  ;;  %v1011_v31 = vmul.f32 %v2476_v10, %v751_v13  ;;  %v247_v4 = vld [vmem:[%s5234_s2 + $0x270] sm:$0xff]  ;;  %v248_v12 = vld [vmem:[%s5234_s2 + $0x278] sm:$0xff]  ;;  %v249_v18 = vld [vmem:[%s5234_s2 + $0x280] sm:$0xff] }
  0x4a   : > { %v496_v32 = vmul.f32 %v2473_v9, %v236_v14  ;;  %1520 = vst.msk [vmem:[%s2527_s28 + $0x1f0] sm:$0xff] %vm1457_vm0, %v1263_v22  ;;  %v1266_v35 = vadd.f32 %v1010_v24, %v494_v23  ;;  %v1012_v36 = vmul.f32 %v2476_v10, %v752_v19  ;;  %v497_v37 = vmul.f32 %v2473_v9, %v237_v20  ;;  %v763_v11 = vld [vmem:[%s5233_s1 + $0x270] sm:$0xff]  ;;  %v764_v17 = vld [vmem:[%s5233_s1 + $0x278] sm:$0xff]  ;;  %v765_v19 = vld [vmem:[%s5233_s1 + $0x280] sm:$0xff] }
  0x4b   : > { %v1013_v38 = vmul.f32 %v2476_v10, %v753_v21  ;;  %1521 = vst.msk [vmem:[%s2527_s28 + $0x1f8] sm:$0xff] %vm1457_vm0, %v1264_v29  ;;  %1522 = vst.msk [vmem:[%s2527_s28 + $0x200] sm:$0xff] %vm1457_vm0, %v1265_v30  ;;  %v1267_v42 = vadd.f32 %v1011_v31, %v495_v25  ;;  %v498_v43 = vmul.f32 %v2473_v9, %v238_v26  ;;  %v250_v24 = vld [vmem:[%s5234_s2 + $0x288] sm:$0xff]  ;;  %v251_v26 = vld [vmem:[%s5234_s2 + $0x290] sm:$0xff] }
  0x4c   : > { %v1014_v44 = vmul.f32 %v2476_v10, %v754_v27  ;;  %v499_v45 = vmul.f32 %v2473_v9, %v239_v28  ;;  %1523 = vst.msk [vmem:[%s2527_s28 + $0x208] sm:$0xff] %vm1457_vm0, %v1266_v35  ;;  %v1268_v49 = vadd.f32 %v1012_v36, %v496_v32  ;;  %v1015_v51 = vmul.f32 %v2476_v10, %v755_v33  ;;  %v766_v25 = vld [vmem:[%s5233_s1 + $0x288] sm:$0xff]  ;;  %v767_v31 = vld [vmem:[%s5233_s1 + $0x290] sm:$0xff]  ;;  %v252_v32 = vld [vmem:[%s5234_s2 + $0x298] sm:$0xff] }
  0x4d   : > { %v1269_v50 = vadd.f32 %v1013_v38, %v497_v37  ;;  %v500_v52 = vmul.f32 %v2473_v9, %v240_v34  ;;  %1524 = vst.msk [vmem:[%s2527_s28 + $0x210] sm:$0xff] %vm1457_vm0, %v1267_v42  ;;  %v1016_v56 = vmul.f32 %v2476_v10, %v756_v39  ;;  %v501_v57 = vmul.f32 %v2473_v9, %v241_v40  ;;  %v768_v37 = vld [vmem:[%s5233_s1 + $0x298] sm:$0xff]  ;;  %v253_v38 = vld [vmem:[%s5234_s2 + $0x2a0] sm:$0xff] }
  0x4e   : > { %v1270_v55 = vadd.f32 %v1014_v44, %v498_v43  ;;  %v1017_v58 = vmul.f32 %v2476_v10, %v757_v41  ;;  %1525 = vst.msk [vmem:[%s2527_s28 + $0x218] sm:$0xff] %vm1457_vm0, %v1268_v49  ;;  %v1271_v62 = vadd.f32 %v1015_v51, %v499_v45  ;;  %v502_v63 = vmul.f32 %v2473_v9, %v242_v46  ;;  %v769_v39 = vld [vmem:[%s5233_s1 + $0x2a0] sm:$0xff]  ;;  %v254_v44 = vld [vmem:[%s5234_s2 + $0x2a8] sm:$0xff]  ;;  %v255_v46 = vld [vmem:[%s5234_s2 + $0x2b0] sm:$0xff] }
  0x4f   : > { %1526 = vst.msk [vmem:[%s2527_s28 + $0x220] sm:$0xff] %vm1457_vm0, %v1269_v50  ;;  %v1018_v0 = vmul.f32 %v2476_v10, %v758_v47  ;;  %v503_v1 = vmul.f32 %v2473_v9, %v243_v48  ;;  %v1272_v5 = vadd.f32 %v1016_v56, %v500_v52  ;;  %v1019_v7 = vmul.f32 %v2476_v10, %v759_v53  ;;  %v770_v45 = vld [vmem:[%s5233_s1 + $0x2a8] sm:$0xff]  ;;  %v771_v51 = vld [vmem:[%s5233_s1 + $0x2b0] sm:$0xff]  ;;  %v256_v52 = vld [vmem:[%s5234_s2 + $0x2b8] sm:$0xff] }
  0x50   : > { %1527 = vst.msk [vmem:[%s2527_s28 + $0x228] sm:$0xff] %vm1457_vm0, %v1270_v55  ;;  %v1273_v6 = vadd.f32 %v1017_v58, %v501_v57  ;;  %v504_v8 = vmul.f32 %v2473_v9, %v244_v54  ;;  %1528 = vst.msk [vmem:[%s2527_s28 + $0x230] sm:$0xff] %vm1457_vm0, %v1271_v62  ;;  %v1020_v14 = vmul.f32 %v2476_v10, %v760_v59  ;;  %v772_v57 = vld [vmem:[%s5233_s1 + $0x2b8] sm:$0xff]  ;;  %v257_v58 = vld [vmem:[%s5234_s2 + $0x2c0] sm:$0xff] }
  0x51   : > { %v1274_v13 = vadd.f32 %v1018_v0, %v502_v63  ;;  %v505_v15 = vmul.f32 %v2473_v9, %v245_v60  ;;  %v1021_v16 = vmul.f32 %v2476_v10, %v761_v61  ;;  %1529 = vst.msk [vmem:[%s2527_s28 + $0x238] sm:$0xff] %vm1457_vm0, %v1272_v5  ;;  %v1275_v20 = vadd.f32 %v1019_v7, %v503_v1  ;;  %v773_v59 = vld [vmem:[%s5233_s1 + $0x2c0] sm:$0xff]  ;;  %v258_v0 = vld [vmem:[%s5234_s2 + $0x2c8] sm:$0xff]  ;;  %v775_v7 = vld [vmem:[%s5233_s1 + $0x2d0] sm:$0xff] }
  0x52   : > { %1530 = vst.msk [vmem:[%s2527_s28 + $0x240] sm:$0xff] %vm1457_vm0, %v1273_v6  ;;  %v506_v21 = vmul.f32 %v2473_v9, %v246_v2  ;;  %v1022_v22 = vmul.f32 %v2476_v10, %v762_v3  ;;  %v507_v23 = vmul.f32 %v2473_v9, %v247_v4  ;;  %v1276_v27 = vadd.f32 %v1020_v14, %v504_v8  ;;  %v774_v1 = vld [vmem:[%s5233_s1 + $0x2c8] sm:$0xff]  ;;  %v259_v2 = vld [vmem:[%s5234_s2 + $0x2d0] sm:$0xff]  ;;  %v3339_v5 = vld [vmem:[%s2461_s12] ss:$0 sm:$0xff] }
  0x53   : > { %1531 = vst.msk [vmem:[%s2527_s28 + $0x248] sm:$0xff] %vm1457_vm0, %v1274_v13  ;;  %v1277_v28 = vadd.f32 %v1021_v16, %v505_v15  ;;  %v1023_v29 = vmul.f32 %v2476_v10, %v763_v11  ;;  %v508_v30 = vmul.f32 %v2473_v9, %v248_v12  ;;  %1532 = vst.msk [vmem:[%s2527_s28 + $0x250] sm:$0xff] %vm1457_vm0, %v1275_v20  ;;  %v260_v8 = vld [vmem:[%s5234_s2 + $0x2d8] sm:$0xff]  ;;  %v261_v16 = vld [vmem:[%s5234_s2 + $0x2e0] sm:$0xff] }
  0x54   : > { %v1278_v33 = vadd.f32 %v1022_v22, %v506_v21  ;;  %v1024_v34 = vmul.f32 %v2476_v10, %v764_v17  ;;  %v509_v35 = vmul.f32 %v2473_v9, %v249_v18  ;;  %v1025_v36 = vmul.f32 %v2476_v10, %v765_v19  ;;  %1533 = vst.msk [vmem:[%s2527_s28 + $0x258] sm:$0xff] %vm1457_vm0, %v1276_v27  ;;  %v776_v15 = vld [vmem:[%s5233_s1 + $0x2d8] sm:$0xff]  ;;  %v777_v17 = vld [vmem:[%s5233_s1 + $0x2e0] sm:$0xff]  ;;  %v262_v22 = vld [vmem:[%s5234_s2 + $0x2e8] sm:$0xff] }
  0x55   : > { %1534 = vst.msk [vmem:[%s2527_s28 + $0x260] sm:$0xff] %vm1457_vm0, %v1277_v28  ;;  %v1279_v40 = vadd.f32 %v1023_v29, %v507_v23  ;;  %v510_v41 = vmul.f32 %v2473_v9, %v250_v24  ;;  %v1026_v42 = vmul.f32 %v2476_v10, %v766_v25  ;;  %v511_v43 = vmul.f32 %v2473_v9, %v251_v26  ;;  %v778_v23 = vld [vmem:[%s5233_s1 + $0x2e8] sm:$0xff]  ;;  %v263_v24 = vld [vmem:[%s5234_s2 + $0x2f0] sm:$0xff] }
  0x56   : > { %1535 = vst.msk [vmem:[%s2527_s28 + $0x268] sm:$0xff] %vm1457_vm0, %v1278_v33  ;;  %v1280_v47 = vadd.f32 %v1024_v34, %v508_v30  ;;  %v1281_v48 = vadd.f32 %v1025_v36, %v509_v35  ;;  %v1027_v49 = vmul.f32 %v2476_v10, %v767_v31  ;;  %v512_v50 = vmul.f32 %v2473_v9, %v252_v32  ;;  %v779_v29 = vld [vmem:[%s5233_s1 + $0x2f0] sm:$0xff]  ;;  %v264_v30 = vld [vmem:[%s5234_s2 + $0x2f8] sm:$0xff]  ;;  %v265_v36 = vld [vmem:[%s5234_s2 + $0x300] sm:$0xff] }
  0x57   : > { %1536 = vst.msk [vmem:[%s2527_s28 + $0x270] sm:$0xff] %vm1457_vm0, %v1279_v40  ;;  %v1282_v53 = vadd.f32 %v1026_v42, %v510_v41  ;;  %v1028_v54 = vmul.f32 %v2476_v10, %v768_v37  ;;  %v513_v55 = vmul.f32 %v2473_v9, %v253_v38  ;;  %v1029_v56 = vmul.f32 %v2476_v10, %v769_v39  ;;  %v780_v35 = vld [vmem:[%s5233_s1 + $0x2f8] sm:$0xff]  ;;  %v781_v37 = vld [vmem:[%s5233_s1 + $0x300] sm:$0xff]  ;;  %v266_v42 = vld [vmem:[%s5234_s2 + $0x308] sm:$0xff] }
  0x58   : > { %1537 = vst.msk [vmem:[%s2527_s28 + $0x278] sm:$0xff] %vm1457_vm0, %v1280_v47  ;;  %1538 = vst.msk [vmem:[%s2527_s28 + $0x280] sm:$0xff] %vm1457_vm0, %v1281_v48  ;;  %v1283_v60 = vadd.f32 %v1027_v49, %v511_v43  ;;  %v514_v61 = vmul.f32 %v2473_v9, %v254_v44  ;;  %v1030_v62 = vmul.f32 %v2476_v10, %v770_v45  ;;  %v3335_v10 = vld [vmem:[%s2461_s12 + $0x1] ss:$0 sm:$0xff]  ;;  %v782_v43 = vld [vmem:[%s5233_s1 + $0x308] sm:$0xff] }
  0x59   : > { %v515_v63 = vmul.f32 %v2473_v9, %v255_v46  ;;  %1539 = vst.msk [vmem:[%s2527_s28 + $0x288] sm:$0xff] %vm1457_vm0, %v1282_v53  ;;  %v1284_v3 = vadd.f32 %v1028_v54, %v512_v50  ;;  %v1285_v4 = vadd.f32 %v1029_v56, %v513_v55  ;;  %v1031_v9 = vmul.f32 %v3335_v10, %v771_v51  ;;  %v267_v44 = vld [vmem:[%s5234_s2 + $0x310] sm:$0xff]  ;;  %v268_v50 = vld [vmem:[%s5234_s2 + $0x318] sm:$0xff]  ;;  %v269_v56 = vld [vmem:[%s5234_s2 + $0x320] sm:$0xff] }
  0x5a   : > { %v516_v6 = vmul.f32 %v3339_v5, %v256_v52  ;;  %1540 = vst.msk [vmem:[%s2527_s28 + $0x290] sm:$0xff] %vm1457_vm0, %v1283_v60  ;;  %v1286_v11 = vadd.f32 %v1030_v62, %v514_v61  ;;  %v1032_v12 = vmul.f32 %v3335_v10, %v772_v57  ;;  %v517_v13 = vmul.f32 %v3339_v5, %v257_v58  ;;  %v783_v49 = vld [vmem:[%s5233_s1 + $0x310] sm:$0xff]  ;;  %v784_v55 = vld [vmem:[%s5233_s1 + $0x318] sm:$0xff]  ;;  %v785_v57 = vld [vmem:[%s5233_s1 + $0x320] sm:$0xff] }
  0x5b   : > { %v1033_v14 = vmul.f32 %v3335_v10, %v773_v59  ;;  %1541 = vst.msk [vmem:[%s2527_s28 + $0x298] sm:$0xff] %vm1457_vm0, %v1284_v3  ;;  %1542 = vst.msk [vmem:[%s2527_s28 + $0x2a0] sm:$0xff] %vm1457_vm0, %v1285_v4  ;;  %v1287_v18 = vadd.f32 %v1031_v9, %v515_v63  ;;  %v518_v19 = vmul.f32 %v3339_v5, %v258_v0  ;;  %v270_v62 = vld [vmem:[%s5234_s2 + $0x328] sm:$0xff]  ;;  %v271_v0 = vld [vmem:[%s5234_s2 + $0x330] sm:$0xff] }
  0x5c   : > { %v1034_v20 = vmul.f32 %v3335_v10, %v774_v1  ;;  %v519_v21 = vmul.f32 %v3339_v5, %v259_v2  ;;  %1543 = vst.msk [vmem:[%s2527_s28 + $0x2a8] sm:$0xff] %vm1457_vm0, %v1286_v11  ;;  %v1288_v25 = vadd.f32 %v1032_v12, %v516_v6  ;;  %v1035_v27 = vmul.f32 %v3335_v10, %v775_v7  ;;  %v786_v63 = vld [vmem:[%s5233_s1 + $0x328] sm:$0xff]  ;;  %v787_v9 = vld [vmem:[%s5233_s1 + $0x330] sm:$0xff]  ;;  %v272_v6 = vld [vmem:[%s5234_s2 + $0x338] sm:$0xff] }
  0x5d   : > { %v1289_v26 = vadd.f32 %v1033_v14, %v517_v13  ;;  %v520_v28 = vmul.f32 %v3339_v5, %v260_v8  ;;  %1544 = vst.msk [vmem:[%s2527_s28 + $0x2b0] sm:$0xff] %vm1457_vm0, %v1287_v18  ;;  %v1036_v32 = vmul.f32 %v3335_v10, %v776_v15  ;;  %v521_v33 = vmul.f32 %v3339_v5, %v261_v16  ;;  %v788_v13 = vld [vmem:[%s5233_s1 + $0x338] sm:$0xff]  ;;  %v273_v14 = vld [vmem:[%s5234_s2 + $0x340] sm:$0xff] }
  0x5e   : > { %v1290_v31 = vadd.f32 %v1034_v20, %v518_v19  ;;  %v1037_v34 = vmul.f32 %v3335_v10, %v777_v17  ;;  %1545 = vst.msk [vmem:[%s2527_s28 + $0x2b8] sm:$0xff] %vm1457_vm0, %v1288_v25  ;;  %v1291_v38 = vadd.f32 %v1035_v27, %v519_v21  ;;  %v522_v39 = vmul.f32 %v3339_v5, %v262_v22  ;;  %v789_v15 = vld [vmem:[%s5233_s1 + $0x340] sm:$0xff]  ;;  %v274_v20 = vld [vmem:[%s5234_s2 + $0x348] sm:$0xff]  ;;  %v275_v22 = vld [vmem:[%s5234_s2 + $0x350] sm:$0xff] }
  0x5f   : > { %1546 = vst.msk [vmem:[%s2527_s28 + $0x2c0] sm:$0xff] %vm1457_vm0, %v1289_v26  ;;  %v1038_v40 = vmul.f32 %v3335_v10, %v778_v23  ;;  %v523_v41 = vmul.f32 %v3339_v5, %v263_v24  ;;  %v1292_v45 = vadd.f32 %v1036_v32, %v520_v28  ;;  %v1039_v47 = vmul.f32 %v3335_v10, %v779_v29  ;;  %v790_v21 = vld [vmem:[%s5233_s1 + $0x348] sm:$0xff]  ;;  %v791_v27 = vld [vmem:[%s5233_s1 + $0x350] sm:$0xff]  ;;  %v276_v28 = vld [vmem:[%s5234_s2 + $0x358] sm:$0xff] }
  0x60   : > { %1547 = vst.msk [vmem:[%s2527_s28 + $0x2c8] sm:$0xff] %vm1457_vm0, %v1290_v31  ;;  %v1293_v46 = vadd.f32 %v1037_v34, %v521_v33  ;;  %v524_v48 = vmul.f32 %v3339_v5, %v264_v30  ;;  %1548 = vst.msk [vmem:[%s2527_s28 + $0x2d0] sm:$0xff] %vm1457_vm0, %v1291_v38  ;;  %v1040_v52 = vmul.f32 %v3335_v10, %v780_v35  ;;  %v792_v33 = vld [vmem:[%s5233_s1 + $0x358] sm:$0xff]  ;;  %v277_v34 = vld [vmem:[%s5234_s2 + $0x360] sm:$0xff] }
  0x61   : > { %v1294_v51 = vadd.f32 %v1038_v40, %v522_v39  ;;  %v525_v53 = vmul.f32 %v3339_v5, %v265_v36  ;;  %v1041_v54 = vmul.f32 %v3335_v10, %v781_v37  ;;  %1549 = vst.msk [vmem:[%s2527_s28 + $0x2d8] sm:$0xff] %vm1457_vm0, %v1292_v45  ;;  %v1295_v58 = vadd.f32 %v1039_v47, %v523_v41  ;;  %v793_v35 = vld [vmem:[%s5233_s1 + $0x360] sm:$0xff]  ;;  %v278_v40 = vld [vmem:[%s5234_s2 + $0x368] sm:$0xff]  ;;  %v795_v47 = vld [vmem:[%s5233_s1 + $0x370] sm:$0xff] }
  0x62   : > { %1550 = vst.msk [vmem:[%s2527_s28 + $0x2e0] sm:$0xff] %vm1457_vm0, %v1293_v46  ;;  %v526_v59 = vmul.f32 %v3339_v5, %v266_v42  ;;  %v1042_v60 = vmul.f32 %v3335_v10, %v782_v43  ;;  %v527_v61 = vmul.f32 %v3339_v5, %v267_v44  ;;  %v1296_v1 = vadd.f32 %v1040_v52, %v524_v48  ;;  %v794_v41 = vld [vmem:[%s5233_s1 + $0x368] sm:$0xff]  ;;  %v279_v42 = vld [vmem:[%s5234_s2 + $0x370] sm:$0xff]  ;;  %v280_v48 = vld [vmem:[%s5234_s2 + $0x378] sm:$0xff] }
  0x63   : > { %1551 = vst.msk [vmem:[%s2527_s28 + $0x2e8] sm:$0xff] %vm1457_vm0, %v1294_v51  ;;  %v1297_v2 = vadd.f32 %v1041_v54, %v525_v53  ;;  %v1043_v3 = vmul.f32 %v3335_v10, %v783_v49  ;;  %v528_v4 = vmul.f32 %v3339_v5, %v268_v50  ;;  %1552 = vst.msk [vmem:[%s2527_s28 + $0x2f0] sm:$0xff] %vm1457_vm0, %v1295_v58  ;;  %v796_v53 = vld [vmem:[%s5233_s1 + $0x378] sm:$0xff]  ;;  %v281_v54 = vld [vmem:[%s5234_s2 + $0x380] sm:$0xff] }
  0x64   : > { %v1298_v7 = vadd.f32 %v1042_v60, %v526_v59  ;;  %v1044_v8 = vmul.f32 %v3335_v10, %v784_v55  ;;  %v529_v11 = vmul.f32 %v3339_v5, %v269_v56  ;;  %v1045_v12 = vmul.f32 %v3335_v10, %v785_v57  ;;  %1553 = vst.msk [vmem:[%s2527_s28 + $0x2f8] sm:$0xff] %vm1457_vm0, %v1296_v1  ;;  %v797_v55 = vld [vmem:[%s5233_s1 + $0x380] sm:$0xff]  ;;  %v282_v60 = vld [vmem:[%s5234_s2 + $0x388] sm:$0xff] }
  0x65   : > { %1554 = vst.msk [vmem:[%s2527_s28 + $0x300] sm:$0xff] %vm1457_vm0, %v1297_v2  ;;  %v1299_v16 = vadd.f32 %v1043_v3, %v527_v61  ;;  %v530_v17 = vmul.f32 %v3339_v5, %v270_v62  ;;  %v1046_v18 = vmul.f32 %v3335_v10, %v786_v63  ;;  %v531_v19 = vmul.f32 %v3339_v5, %v271_v0  ;;  %v798_v61 = vld [vmem:[%s5233_s1 + $0x388] sm:$0xff]  ;;  %v283_v62 = vld [vmem:[%s5234_s2 + $0x390] sm:$0xff] }
  0x66   : > { %1555 = vst.msk [vmem:[%s2527_s28 + $0x308] sm:$0xff] %vm1457_vm0, %v1298_v7  ;;  %v1300_v23 = vadd.f32 %v1044_v8, %v528_v4  ;;  %v1301_v24 = vadd.f32 %v1045_v12, %v529_v11  ;;  %v1047_v25 = vmul.f32 %v3335_v10, %v787_v9  ;;  %v532_v26 = vmul.f32 %v3339_v5, %v272_v6  ;;  %v799_v3 = vld [vmem:[%s5233_s1 + $0x390] sm:$0xff]  ;;  %v284_v4 = vld [vmem:[%s5234_s2 + $0x398] sm:$0xff]  ;;  %v285_v12 = vld [vmem:[%s5234_s2 + $0x3a0] sm:$0xff] }
  0x67   : > { %1556 = vst.msk [vmem:[%s2527_s28 + $0x310] sm:$0xff] %vm1457_vm0, %v1299_v16  ;;  %v1302_v29 = vadd.f32 %v1046_v18, %v530_v17  ;;  %v1048_v30 = vmul.f32 %v3335_v10, %v788_v13  ;;  %v533_v31 = vmul.f32 %v3339_v5, %v273_v14  ;;  %v1049_v32 = vmul.f32 %v3335_v10, %v789_v15  ;;  %v800_v11 = vld [vmem:[%s5233_s1 + $0x398] sm:$0xff]  ;;  %v801_v13 = vld [vmem:[%s5233_s1 + $0x3a0] sm:$0xff]  ;;  %v286_v18 = vld [vmem:[%s5234_s2 + $0x3a8] sm:$0xff] }
  0x68   : > { %1557 = vst.msk [vmem:[%s2527_s28 + $0x318] sm:$0xff] %vm1457_vm0, %v1300_v23  ;;  %1558 = vst.msk [vmem:[%s2527_s28 + $0x320] sm:$0xff] %vm1457_vm0, %v1301_v24  ;;  %v1303_v36 = vadd.f32 %v1047_v25, %v531_v19  ;;  %v534_v37 = vmul.f32 %v3339_v5, %v274_v20  ;;  %v1050_v38 = vmul.f32 %v3335_v10, %v790_v21  ;;  %v802_v19 = vld [vmem:[%s5233_s1 + $0x3a8] sm:$0xff]  ;;  %v287_v20 = vld [vmem:[%s5234_s2 + $0x3b0] sm:$0xff] }
  0x69   : > { %v535_v39 = vmul.f32 %v3339_v5, %v275_v22  ;;  %1559 = vst.msk [vmem:[%s2527_s28 + $0x328] sm:$0xff] %vm1457_vm0, %v1302_v29  ;;  %v1304_v43 = vadd.f32 %v1048_v30, %v532_v26  ;;  %v1305_v44 = vadd.f32 %v1049_v32, %v533_v31  ;;  %v1051_v45 = vmul.f32 %v3335_v10, %v791_v27  ;;  %v803_v25 = vld [vmem:[%s5233_s1 + $0x3b0] sm:$0xff]  ;;  %v288_v26 = vld [vmem:[%s5234_s2 + $0x3b8] sm:$0xff]  ;;  %v289_v32 = vld [vmem:[%s5234_s2 + $0x3c0] sm:$0xff] }
  0x6a   : > { %v536_v46 = vmul.f32 %v3339_v5, %v276_v28  ;;  %1560 = vst.msk [vmem:[%s2527_s28 + $0x330] sm:$0xff] %vm1457_vm0, %v1303_v36  ;;  %v1306_v49 = vadd.f32 %v1050_v38, %v534_v37  ;;  %v1052_v50 = vmul.f32 %v3335_v10, %v792_v33  ;;  %v537_v51 = vmul.f32 %v3339_v5, %v277_v34  ;;  %v804_v31 = vld [vmem:[%s5233_s1 + $0x3b8] sm:$0xff]  ;;  %v805_v33 = vld [vmem:[%s5233_s1 + $0x3c0] sm:$0xff]  ;;  %v290_v38 = vld [vmem:[%s5234_s2 + $0x3c8] sm:$0xff] }
  0x6b   : > { %v1053_v52 = vmul.f32 %v3335_v10, %v793_v35  ;;  %1561 = vst.msk [vmem:[%s2527_s28 + $0x338] sm:$0xff] %vm1457_vm0, %v1304_v43  ;;  %1562 = vst.msk [vmem:[%s2527_s28 + $0x340] sm:$0xff] %vm1457_vm0, %v1305_v44  ;;  %v1307_v56 = vadd.f32 %v1051_v45, %v535_v39  ;;  %v538_v57 = vmul.f32 %v3339_v5, %v278_v40  ;;  %v806_v39 = vld [vmem:[%s5233_s1 + $0x3c8] sm:$0xff]  ;;  %v291_v40 = vld [vmem:[%s5234_s2 + $0x3d0] sm:$0xff] }
  0x6c   : > { %v1054_v58 = vmul.f32 %v3335_v10, %v794_v41  ;;  %v539_v59 = vmul.f32 %v3339_v5, %v279_v42  ;;  %1563 = vst.msk [vmem:[%s2527_s28 + $0x348] sm:$0xff] %vm1457_vm0, %v1306_v49  ;;  %v1308_v63 = vadd.f32 %v1052_v50, %v536_v46  ;;  %v1055_v1 = vmul.f32 %v3335_v10, %v795_v47  ;;  %v807_v45 = vld [vmem:[%s5233_s1 + $0x3d0] sm:$0xff]  ;;  %v292_v46 = vld [vmem:[%s5234_s2 + $0x3d8] sm:$0xff] }
  0x6d   : > { %v1309_v0 = vadd.f32 %v1053_v52, %v537_v51  ;;  %v540_v2 = vmul.f32 %v3339_v5, %v280_v48  ;;  %1564 = vst.msk [vmem:[%s2527_s28 + $0x350] sm:$0xff] %vm1457_vm0, %v1307_v56  ;;  %v1056_v6 = vmul.f32 %v3335_v10, %v796_v53  ;;  %v541_v7 = vmul.f32 %v3339_v5, %v281_v54  ;;  %v808_v51 = vld [vmem:[%s5233_s1 + $0x3d8] sm:$0xff]  ;;  %v293_v52 = vld [vmem:[%s5234_s2 + $0x3e0] sm:$0xff] }
  0x6e   : > { %v1310_v9 = vadd.f32 %v1054_v58, %v538_v57  ;;  %v1057_v8 = vmul.f32 %v3335_v10, %v797_v55  ;;  %1565 = vst.msk [vmem:[%s2527_s28 + $0x358] sm:$0xff] %vm1457_vm0, %v1308_v63  ;;  %v1311_v14 = vadd.f32 %v1055_v1, %v539_v59  ;;  %v542_v15 = vmul.f32 %v3339_v5, %v282_v60  ;;  %v809_v53 = vld [vmem:[%s5233_s1 + $0x3e0] sm:$0xff]  ;;  %v294_v58 = vld [vmem:[%s5234_s2 + $0x3e8] sm:$0xff]  ;;  %v295_v60 = vld [vmem:[%s5234_s2 + $0x3f0] sm:$0xff] }
  0x6f   : > { %1566 = vst.msk [vmem:[%s2527_s28 + $0x360] sm:$0xff] %vm1457_vm0, %v1309_v0  ;;  %v1058_v16 = vmul.f32 %v3335_v10, %v798_v61  ;;  %v543_v17 = vmul.f32 %v3339_v5, %v283_v62  ;;  %v1312_v21 = vadd.f32 %v1056_v6, %v540_v2  ;;  %v1059_v23 = vmul.f32 %v3335_v10, %v799_v3  ;;  %v810_v59 = vld [vmem:[%s5233_s1 + $0x3e8] sm:$0xff]  ;;  %v811_v1 = vld [vmem:[%s5233_s1 + $0x3f0] sm:$0xff]  ;;  %v296_v2 = vld [vmem:[%s5234_s2 + $0x3f8] sm:$0xff] }
  0x70   : > { %1567 = vst.msk [vmem:[%s2527_s28 + $0x368] sm:$0xff] %vm1457_vm0, %v1310_v9  ;;  %v1313_v22 = vadd.f32 %v1057_v8, %v541_v7  ;;  %v544_v24 = vmul.f32 %v3339_v5, %v284_v4  ;;  %1568 = vst.msk [vmem:[%s2527_s28 + $0x370] sm:$0xff] %vm1457_vm0, %v1311_v14  ;;  %v1060_v28 = vmul.f32 %v3335_v10, %v800_v11  ;;  %v812_v7 = vld [vmem:[%s5233_s1 + $0x3f8] sm:$0xff]  ;;  %v297_v8 = vld [vmem:[%s5234_s2 + $0x400] sm:$0xff] }
  0x71   : > { %v1314_v27 = vadd.f32 %v1058_v16, %v542_v15  ;;  %v545_v29 = vmul.f32 %v3339_v5, %v285_v12  ;;  %v1061_v30 = vmul.f32 %v3335_v10, %v801_v13  ;;  %1569 = vst.msk [vmem:[%s2527_s28 + $0x378] sm:$0xff] %vm1457_vm0, %v1312_v21  ;;  %v1315_v34 = vadd.f32 %v1059_v23, %v543_v17  ;;  %v813_v11 = vld [vmem:[%s5233_s1 + $0x400] sm:$0xff]  ;;  %v298_v16 = vld [vmem:[%s5234_s2 + $0x408] sm:$0xff]  ;;  %v815_v23 = vld [vmem:[%s5233_s1 + $0x410] sm:$0xff] }
  0x72   : > { %1570 = vst.msk [vmem:[%s2527_s28 + $0x380] sm:$0xff] %vm1457_vm0, %v1313_v22  ;;  %v546_v35 = vmul.f32 %v3339_v5, %v286_v18  ;;  %v1062_v36 = vmul.f32 %v3335_v10, %v802_v19  ;;  %v547_v37 = vmul.f32 %v3339_v5, %v287_v20  ;;  %v1316_v41 = vadd.f32 %v1060_v28, %v544_v24  ;;  %v814_v17 = vld [vmem:[%s5233_s1 + $0x408] sm:$0xff]  ;;  %v299_v18 = vld [vmem:[%s5234_s2 + $0x410] sm:$0xff]  ;;  %v300_v24 = vld [vmem:[%s5234_s2 + $0x418] sm:$0xff] }
  0x73   : > { %1571 = vst.msk [vmem:[%s2527_s28 + $0x388] sm:$0xff] %vm1457_vm0, %v1314_v27  ;;  %v1317_v42 = vadd.f32 %v1061_v30, %v545_v29  ;;  %v1063_v43 = vmul.f32 %v3335_v10, %v803_v25  ;;  %v548_v44 = vmul.f32 %v3339_v5, %v288_v26  ;;  %1572 = vst.msk [vmem:[%s2527_s28 + $0x390] sm:$0xff] %vm1457_vm0, %v1315_v34  ;;  %v816_v29 = vld [vmem:[%s5233_s1 + $0x418] sm:$0xff]  ;;  %v301_v30 = vld [vmem:[%s5234_s2 + $0x420] sm:$0xff] }
  0x74   : > { %v1318_v47 = vadd.f32 %v1062_v36, %v546_v35  ;;  %v1064_v48 = vmul.f32 %v3335_v10, %v804_v31  ;;  %v549_v49 = vmul.f32 %v3339_v5, %v289_v32  ;;  %v1065_v50 = vmul.f32 %v3335_v10, %v805_v33  ;;  %1573 = vst.msk [vmem:[%s2527_s28 + $0x398] sm:$0xff] %vm1457_vm0, %v1316_v41  ;;  %v817_v31 = vld [vmem:[%s5233_s1 + $0x420] sm:$0xff]  ;;  %v302_v36 = vld [vmem:[%s5234_s2 + $0x428] sm:$0xff] }
  0x75   : > { %1574 = vst.msk [vmem:[%s2527_s28 + $0x3a0] sm:$0xff] %vm1457_vm0, %v1317_v42  ;;  %v1319_v54 = vadd.f32 %v1063_v43, %v547_v37  ;;  %v550_v55 = vmul.f32 %v3339_v5, %v290_v38  ;;  %v1066_v56 = vmul.f32 %v3335_v10, %v806_v39  ;;  %v551_v57 = vmul.f32 %v3339_v5, %v291_v40  ;;  %v818_v37 = vld [vmem:[%s5233_s1 + $0x428] sm:$0xff]  ;;  %v303_v38 = vld [vmem:[%s5234_s2 + $0x430] sm:$0xff] }
  0x76   : > { %1575 = vst.msk [vmem:[%s2527_s28 + $0x3a8] sm:$0xff] %vm1457_vm0, %v1318_v47  ;;  %v1320_v61 = vadd.f32 %v1064_v48, %v548_v44  ;;  %v1321_v62 = vadd.f32 %v1065_v50, %v549_v49  ;;  %v1067_v63 = vmul.f32 %v3335_v10, %v807_v45  ;;  %v552_v0 = vmul.f32 %v3339_v5, %v292_v46  ;;  %v819_v43 = vld [vmem:[%s5233_s1 + $0x430] sm:$0xff]  ;;  %v304_v44 = vld [vmem:[%s5234_s2 + $0x438] sm:$0xff]  ;;  %v305_v50 = vld [vmem:[%s5234_s2 + $0x440] sm:$0xff] }
  0x77   : > { %1576 = vst.msk [vmem:[%s2527_s28 + $0x3b0] sm:$0xff] %vm1457_vm0, %v1319_v54  ;;  %v1322_v3 = vadd.f32 %v1066_v56, %v550_v55  ;;  %v1068_v4 = vmul.f32 %v3335_v10, %v808_v51  ;;  %v553_v9 = vmul.f32 %v3339_v5, %v293_v52  ;;  %v1069_v6 = vmul.f32 %v3335_v10, %v809_v53  ;;  %v820_v49 = vld [vmem:[%s5233_s1 + $0x438] sm:$0xff]  ;;  %v821_v51 = vld [vmem:[%s5233_s1 + $0x440] sm:$0xff]  ;;  %v306_v56 = vld [vmem:[%s5234_s2 + $0x448] sm:$0xff] }
  0x78   : > { %1577 = vst.msk [vmem:[%s2527_s28 + $0x3b8] sm:$0xff] %vm1457_vm0, %v1320_v61  ;;  %1578 = vst.msk [vmem:[%s2527_s28 + $0x3c0] sm:$0xff] %vm1457_vm0, %v1321_v62  ;;  %v1323_v12 = vadd.f32 %v1067_v63, %v551_v57  ;;  %v554_v13 = vmul.f32 %v3339_v5, %v294_v58  ;;  %v1070_v14 = vmul.f32 %v3335_v10, %v810_v59  ;;  %v822_v57 = vld [vmem:[%s5233_s1 + $0x448] sm:$0xff]  ;;  %v307_v58 = vld [vmem:[%s5234_s2 + $0x450] sm:$0xff] }
  0x79   : > { %v555_v15 = vmul.f32 %v3339_v5, %v295_v60  ;;  %1579 = vst.msk [vmem:[%s2527_s28 + $0x3c8] sm:$0xff] %vm1457_vm0, %v1322_v3  ;;  %v1324_v19 = vadd.f32 %v1068_v4, %v552_v0  ;;  %v1325_v20 = vadd.f32 %v1069_v6, %v553_v9  ;;  %v1071_v21 = vmul.f32 %v3335_v10, %v811_v1  ;;  %v823_v63 = vld [vmem:[%s5233_s1 + $0x450] sm:$0xff]  ;;  %v308_v0 = vld [vmem:[%s5234_s2 + $0x458] sm:$0xff]  ;;  %v309_v6 = vld [vmem:[%s5234_s2 + $0x460] sm:$0xff] }
  0x7a   : > { %v556_v22 = vmul.f32 %v3339_v5, %v296_v2  ;;  %1580 = vst.msk [vmem:[%s2527_s28 + $0x3d0] sm:$0xff] %vm1457_vm0, %v1323_v12  ;;  %v1326_v25 = vadd.f32 %v1070_v14, %v554_v13  ;;  %v1072_v26 = vmul.f32 %v3335_v10, %v812_v7  ;;  %v557_v27 = vmul.f32 %v3339_v5, %v297_v8  ;;  %v824_v9 = vld [vmem:[%s5233_s1 + $0x458] sm:$0xff]  ;;  %v825_v7 = vld [vmem:[%s5233_s1 + $0x460] sm:$0xff]  ;;  %v310_v14 = vld [vmem:[%s5234_s2 + $0x468] sm:$0xff] }
  0x7b   : > { %v1073_v28 = vmul.f32 %v3335_v10, %v813_v11  ;;  %1581 = vst.msk [vmem:[%s2527_s28 + $0x3d8] sm:$0xff] %vm1457_vm0, %v1324_v19  ;;  %1582 = vst.msk [vmem:[%s2527_s28 + $0x3e0] sm:$0xff] %vm1457_vm0, %v1325_v20  ;;  %v1327_v32 = vadd.f32 %v1071_v21, %v555_v15  ;;  %v558_v33 = vmul.f32 %v3339_v5, %v298_v16  ;;  %v826_v15 = vld [vmem:[%s5233_s1 + $0x468] sm:$0xff]  ;;  %v311_v16 = vld [vmem:[%s5234_s2 + $0x470] sm:$0xff] }
  0x7c   : > { %v1074_v34 = vmul.f32 %v3335_v10, %v814_v17  ;;  %v559_v35 = vmul.f32 %v3339_v5, %v299_v18  ;;  %1583 = vst.msk [vmem:[%s2527_s28 + $0x3e8] sm:$0xff] %vm1457_vm0, %v1326_v25  ;;  %v1328_v39 = vadd.f32 %v1072_v26, %v556_v22  ;;  %v1075_v41 = vmul.f32 %v3335_v10, %v815_v23  ;;  %v827_v21 = vld [vmem:[%s5233_s1 + $0x470] sm:$0xff]  ;;  %v312_v22 = vld [vmem:[%s5234_s2 + $0x478] sm:$0xff] }
  0x7d   : > { %v1329_v40 = vadd.f32 %v1073_v28, %v557_v27  ;;  %v560_v42 = vmul.f32 %v3339_v5, %v300_v24  ;;  %1584 = vst.msk [vmem:[%s2527_s28 + $0x3f0] sm:$0xff] %vm1457_vm0, %v1327_v32  ;;  %v1076_v46 = vmul.f32 %v3335_v10, %v816_v29  ;;  %v561_v47 = vmul.f32 %v3339_v5, %v301_v30  ;;  %v828_v27 = vld [vmem:[%s5233_s1 + $0x478] sm:$0xff]  ;;  %v313_v28 = vld [vmem:[%s5234_s2 + $0x480] sm:$0xff] }
  0x7e   : > { %v1330_v45 = vadd.f32 %v1074_v34, %v558_v33  ;;  %v1077_v48 = vmul.f32 %v3335_v10, %v817_v31  ;;  %1585 = vst.msk [vmem:[%s2527_s28 + $0x3f8] sm:$0xff] %vm1457_vm0, %v1328_v39  ;;  %v1331_v52 = vadd.f32 %v1075_v41, %v559_v35  ;;  %v562_v53 = vmul.f32 %v3339_v5, %v302_v36  ;;  %v829_v29 = vld [vmem:[%s5233_s1 + $0x480] sm:$0xff]  ;;  %v314_v34 = vld [vmem:[%s5234_s2 + $0x488] sm:$0xff]  ;;  %v315_v36 = vld [vmem:[%s5234_s2 + $0x490] sm:$0xff] }
  0x7f   : > { %1586 = vst.msk [vmem:[%s2527_s28 + $0x400] sm:$0xff] %vm1457_vm0, %v1329_v40  ;;  %v1078_v54 = vmul.f32 %v3335_v10, %v818_v37  ;;  %v563_v55 = vmul.f32 %v3339_v5, %v303_v38  ;;  %v1332_v59 = vadd.f32 %v1076_v46, %v560_v42  ;;  %v1079_v61 = vmul.f32 %v3335_v10, %v819_v43  ;;  %v830_v35 = vld [vmem:[%s5233_s1 + $0x488] sm:$0xff]  ;;  %v831_v41 = vld [vmem:[%s5233_s1 + $0x490] sm:$0xff]  ;;  %v316_v42 = vld [vmem:[%s5234_s2 + $0x498] sm:$0xff] }
  0x80   : > { %1587 = vst.msk [vmem:[%s2527_s28 + $0x408] sm:$0xff] %vm1457_vm0, %v1330_v45  ;;  %v1333_v60 = vadd.f32 %v1077_v48, %v561_v47  ;;  %v564_v62 = vmul.f32 %v3339_v5, %v304_v44  ;;  %1588 = vst.msk [vmem:[%s2527_s28 + $0x410] sm:$0xff] %vm1457_vm0, %v1331_v52  ;;  %v1080_v2 = vmul.f32 %v3335_v10, %v820_v49  ;;  %v832_v47 = vld [vmem:[%s5233_s1 + $0x498] sm:$0xff]  ;;  %v317_v48 = vld [vmem:[%s5234_s2 + $0x4a0] sm:$0xff] }
  0x81   : > { %v1334_v1 = vadd.f32 %v1078_v54, %v562_v53  ;;  %v565_v3 = vmul.f32 %v3339_v5, %v305_v50  ;;  %v1081_v4 = vmul.f32 %v3335_v10, %v821_v51  ;;  %1589 = vst.msk [vmem:[%s2527_s28 + $0x418] sm:$0xff] %vm1457_vm0, %v1332_v59  ;;  %v1335_v8 = vadd.f32 %v1079_v61, %v563_v55  ;;  %v833_v49 = vld [vmem:[%s5233_s1 + $0x4a0] sm:$0xff]  ;;  %v318_v54 = vld [vmem:[%s5234_s2 + $0x4a8] sm:$0xff]  ;;  %v835_v61 = vld [vmem:[%s5233_s1 + $0x4b0] sm:$0xff] }
  0x82   : > { %1590 = vst.msk [vmem:[%s2527_s28 + $0x420] sm:$0xff] %vm1457_vm0, %v1333_v60  ;;  %v566_v11 = vmul.f32 %v3339_v5, %v306_v56  ;;  %v1082_v12 = vmul.f32 %v3335_v10, %v822_v57  ;;  %v567_v13 = vmul.f32 %v3339_v5, %v307_v58  ;;  %v1336_v17 = vadd.f32 %v1080_v2, %v564_v62  ;;  %v834_v55 = vld [vmem:[%s5233_s1 + $0x4a8] sm:$0xff]  ;;  %v319_v56 = vld [vmem:[%s5234_s2 + $0x4b0] sm:$0xff]  ;;  %v320_v62 = vld [vmem:[%s5234_s2 + $0x4b8] sm:$0xff] }
  0x83   : > { %1591 = vst.msk [vmem:[%s2527_s28 + $0x428] sm:$0xff] %vm1457_vm0, %v1334_v1  ;;  %v1337_v18 = vadd.f32 %v1081_v4, %v565_v3  ;;  %v1083_v19 = vmul.f32 %v3335_v10, %v823_v63  ;;  %v568_v20 = vmul.f32 %v3339_v5, %v308_v0  ;;  %1592 = vst.msk [vmem:[%s2527_s28 + $0x430] sm:$0xff] %vm1457_vm0, %v1335_v8  ;;  %v836_v3 = vld [vmem:[%s5233_s1 + $0x4b8] sm:$0xff]  ;;  %v321_v4 = vld [vmem:[%s5234_s2 + $0x4c0] sm:$0xff] }
  0x84   : > { %v1338_v23 = vadd.f32 %v1082_v12, %v566_v11  ;;  %v1084_v24 = vmul.f32 %v3335_v10, %v824_v9  ;;  %v569_v25 = vmul.f32 %v3339_v5, %v309_v6  ;;  %v1085_v26 = vmul.f32 %v3335_v10, %v825_v7  ;;  %1593 = vst.msk [vmem:[%s2527_s28 + $0x438] sm:$0xff] %vm1457_vm0, %v1336_v17  ;;  %v837_v9 = vld [vmem:[%s5233_s1 + $0x4c0] sm:$0xff]  ;;  %v322_v12 = vld [vmem:[%s5234_s2 + $0x4c8] sm:$0xff] }
  0x85   : > { %1594 = vst.msk [vmem:[%s2527_s28 + $0x440] sm:$0xff] %vm1457_vm0, %v1337_v18  ;;  %v1339_v30 = vadd.f32 %v1083_v19, %v567_v13  ;;  %v570_v31 = vmul.f32 %v3339_v5, %v310_v14  ;;  %v1086_v32 = vmul.f32 %v3335_v10, %v826_v15  ;;  %v571_v33 = vmul.f32 %v3339_v5, %v311_v16  ;;  %v838_v13 = vld [vmem:[%s5233_s1 + $0x4c8] sm:$0xff]  ;;  %v323_v14 = vld [vmem:[%s5234_s2 + $0x4d0] sm:$0xff] }
  0x86   : > { %1595 = vst.msk [vmem:[%s2527_s28 + $0x448] sm:$0xff] %vm1457_vm0, %v1338_v23  ;;  %v1340_v37 = vadd.f32 %v1084_v24, %v568_v20  ;;  %v1341_v38 = vadd.f32 %v1085_v26, %v569_v25  ;;  %v1087_v39 = vmul.f32 %v3335_v10, %v827_v21  ;;  %v572_v40 = vmul.f32 %v3339_v5, %v312_v22  ;;  %v839_v19 = vld [vmem:[%s5233_s1 + $0x4d0] sm:$0xff]  ;;  %v324_v20 = vld [vmem:[%s5234_s2 + $0x4d8] sm:$0xff]  ;;  %v325_v26 = vld [vmem:[%s5234_s2 + $0x4e0] sm:$0xff] }
  0x87   : > { %1596 = vst.msk [vmem:[%s2527_s28 + $0x450] sm:$0xff] %vm1457_vm0, %v1339_v30  ;;  %v1342_v43 = vadd.f32 %v1086_v32, %v570_v31  ;;  %v1088_v44 = vmul.f32 %v3335_v10, %v828_v27  ;;  %v573_v45 = vmul.f32 %v3339_v5, %v313_v28  ;;  %v1089_v46 = vmul.f32 %v3335_v10, %v829_v29  ;;  %v840_v25 = vld [vmem:[%s5233_s1 + $0x4d8] sm:$0xff]  ;;  %v841_v27 = vld [vmem:[%s5233_s1 + $0x4e0] sm:$0xff]  ;;  %v326_v32 = vld [vmem:[%s5234_s2 + $0x4e8] sm:$0xff] }
  0x88   : > { %1597 = vst.msk [vmem:[%s2527_s28 + $0x458] sm:$0xff] %vm1457_vm0, %v1340_v37  ;;  %1598 = vst.msk [vmem:[%s2527_s28 + $0x460] sm:$0xff] %vm1457_vm0, %v1341_v38  ;;  %v1343_v50 = vadd.f32 %v1087_v39, %v571_v33  ;;  %v574_v51 = vmul.f32 %v3339_v5, %v314_v34  ;;  %v1090_v52 = vmul.f32 %v3335_v10, %v830_v35  ;;  %v842_v33 = vld [vmem:[%s5233_s1 + $0x4e8] sm:$0xff]  ;;  %v327_v34 = vld [vmem:[%s5234_s2 + $0x4f0] sm:$0xff] }
  0x89   : > { %v575_v53 = vmul.f32 %v3339_v5, %v315_v36  ;;  %1599 = vst.msk [vmem:[%s2527_s28 + $0x468] sm:$0xff] %vm1457_vm0, %v1342_v43  ;;  %v1344_v57 = vadd.f32 %v1088_v44, %v572_v40  ;;  %v1345_v58 = vadd.f32 %v1089_v46, %v573_v45  ;;  %v1091_v59 = vmul.f32 %v3335_v10, %v831_v41  ;;  %v843_v39 = vld [vmem:[%s5233_s1 + $0x4f0] sm:$0xff]  ;;  %v328_v40 = vld [vmem:[%s5234_s2 + $0x4f8] sm:$0xff]  ;;  %v329_v46 = vld [vmem:[%s5234_s2 + $0x500] sm:$0xff] }
  0x8a   : > { %v576_v60 = vmul.f32 %v3339_v5, %v316_v42  ;;  %1600 = vst.msk [vmem:[%s2527_s28 + $0x470] sm:$0xff] %vm1457_vm0, %v1343_v50  ;;  %v1346_v63 = vadd.f32 %v1090_v52, %v574_v51  ;;  %v1092_v0 = vmul.f32 %v3335_v10, %v832_v47  ;;  %v577_v1 = vmul.f32 %v3339_v5, %v317_v48  ;;  %v844_v45 = vld [vmem:[%s5233_s1 + $0x4f8] sm:$0xff]  ;;  %v845_v47 = vld [vmem:[%s5233_s1 + $0x500] sm:$0xff]  ;;  %v330_v52 = vld [vmem:[%s5234_s2 + $0x508] sm:$0xff] }
  0x8b   : > { %v1093_v2 = vmul.f32 %v3335_v10, %v833_v49  ;;  %1601 = vst.msk [vmem:[%s2527_s28 + $0x478] sm:$0xff] %vm1457_vm0, %v1344_v57  ;;  %1602 = vst.msk [vmem:[%s2527_s28 + $0x480] sm:$0xff] %vm1457_vm0, %v1345_v58  ;;  %v1347_v6 = vadd.f32 %v1091_v59, %v575_v53  ;;  %v578_v7 = vmul.f32 %v3339_v5, %v318_v54  ;;  %v846_v53 = vld [vmem:[%s5233_s1 + $0x508] sm:$0xff]  ;;  %v331_v54 = vld [vmem:[%s5234_s2 + $0x510] sm:$0xff] }
  0x8c   : > { %v1094_v8 = vmul.f32 %v3335_v10, %v834_v55  ;;  %v579_v11 = vmul.f32 %v3339_v5, %v319_v56  ;;  %1603 = vst.msk [vmem:[%s2527_s28 + $0x488] sm:$0xff] %vm1457_vm0, %v1346_v63  ;;  %v1348_v15 = vadd.f32 %v1092_v0, %v576_v60  ;;  %v1095_v17 = vmul.f32 %v3335_v10, %v835_v61  ;;  %v847_v59 = vld [vmem:[%s5233_s1 + $0x510] sm:$0xff]  ;;  %v332_v60 = vld [vmem:[%s5234_s2 + $0x518] sm:$0xff] }
  0x8d   : > { %v1349_v16 = vadd.f32 %v1093_v2, %v577_v1  ;;  %v580_v18 = vmul.f32 %v3339_v5, %v320_v62  ;;  %1604 = vst.msk [vmem:[%s2527_s28 + $0x490] sm:$0xff] %vm1457_vm0, %v1347_v6  ;;  %v1096_v22 = vmul.f32 %v3335_v10, %v836_v3  ;;  %v581_v23 = vmul.f32 %v3339_v5, %v321_v4  ;;  %v848_v1 = vld [vmem:[%s5233_s1 + $0x518] sm:$0xff]  ;;  %v333_v2 = vld [vmem:[%s5234_s2 + $0x520] sm:$0xff] }
  0x8e   : > { %v1350_v21 = vadd.f32 %v1094_v8, %v578_v7  ;;  %v1097_v24 = vmul.f32 %v3335_v10, %v837_v9  ;;  %1605 = vst.msk [vmem:[%s2527_s28 + $0x498] sm:$0xff] %vm1457_vm0, %v1348_v15  ;;  %v1351_v28 = vadd.f32 %v1095_v17, %v579_v11  ;;  %v582_v29 = vmul.f32 %v3339_v5, %v322_v12  ;;  %v849_v3 = vld [vmem:[%s5233_s1 + $0x520] sm:$0xff]  ;;  %v334_v8 = vld [vmem:[%s5234_s2 + $0x528] sm:$0xff]  ;;  %v335_v12 = vld [vmem:[%s5234_s2 + $0x530] sm:$0xff] }
  0x8f   : > { %1606 = vst.msk [vmem:[%s2527_s28 + $0x4a0] sm:$0xff] %vm1457_vm0, %v1349_v16  ;;  %v1098_v30 = vmul.f32 %v3335_v10, %v838_v13  ;;  %v583_v31 = vmul.f32 %v3339_v5, %v323_v14  ;;  %v1352_v35 = vadd.f32 %v1096_v22, %v580_v18  ;;  %v1099_v37 = vmul.f32 %v3335_v10, %v839_v19  ;;  %v850_v11 = vld [vmem:[%s5233_s1 + $0x528] sm:$0xff]  ;;  %v851_v17 = vld [vmem:[%s5233_s1 + $0x530] sm:$0xff]  ;;  %v336_v18 = vld [vmem:[%s5234_s2 + $0x538] sm:$0xff] }
  0x90   : > { %1607 = vst.msk [vmem:[%s2527_s28 + $0x4a8] sm:$0xff] %vm1457_vm0, %v1350_v21  ;;  %v1353_v36 = vadd.f32 %v1097_v24, %v581_v23  ;;  %v584_v38 = vmul.f32 %v3339_v5, %v324_v20  ;;  %1608 = vst.msk [vmem:[%s2527_s28 + $0x4b0] sm:$0xff] %vm1457_vm0, %v1351_v28  ;;  %v1100_v42 = vmul.f32 %v3335_v10, %v840_v25  ;;  %v852_v23 = vld [vmem:[%s5233_s1 + $0x538] sm:$0xff]  ;;  %v337_v24 = vld [vmem:[%s5234_s2 + $0x540] sm:$0xff] }
  0x91   : > { %v1354_v41 = vadd.f32 %v1098_v30, %v582_v29  ;;  %v585_v43 = vmul.f32 %v3339_v5, %v325_v26  ;;  %v1101_v44 = vmul.f32 %v3335_v10, %v841_v27  ;;  %1609 = vst.msk [vmem:[%s2527_s28 + $0x4b8] sm:$0xff] %vm1457_vm0, %v1352_v35  ;;  %v1355_v48 = vadd.f32 %v1099_v37, %v583_v31  ;;  %v853_v25 = vld [vmem:[%s5233_s1 + $0x540] sm:$0xff]  ;;  %v338_v30 = vld [vmem:[%s5234_s2 + $0x548] sm:$0xff]  ;;  %v855_v37 = vld [vmem:[%s5233_s1 + $0x550] sm:$0xff] }
  0x92   : > { %1610 = vst.msk [vmem:[%s2527_s28 + $0x4c0] sm:$0xff] %vm1457_vm0, %v1353_v36  ;;  %v586_v49 = vmul.f32 %v3339_v5, %v326_v32  ;;  %v1102_v50 = vmul.f32 %v3335_v10, %v842_v33  ;;  %v587_v51 = vmul.f32 %v3339_v5, %v327_v34  ;;  %v1356_v55 = vadd.f32 %v1100_v42, %v584_v38  ;;  %v854_v31 = vld [vmem:[%s5233_s1 + $0x548] sm:$0xff]  ;;  %v339_v32 = vld [vmem:[%s5234_s2 + $0x550] sm:$0xff]  ;;  %v340_v38 = vld [vmem:[%s5234_s2 + $0x558] sm:$0xff] }
  0x93   : > { %1611 = vst.msk [vmem:[%s2527_s28 + $0x4c8] sm:$0xff] %vm1457_vm0, %v1354_v41  ;;  %v1357_v56 = vadd.f32 %v1101_v44, %v585_v43  ;;  %v1103_v57 = vmul.f32 %v3335_v10, %v843_v39  ;;  %v588_v58 = vmul.f32 %v3339_v5, %v328_v40  ;;  %1612 = vst.msk [vmem:[%s2527_s28 + $0x4d0] sm:$0xff] %vm1457_vm0, %v1355_v48  ;;  %v856_v43 = vld [vmem:[%s5233_s1 + $0x558] sm:$0xff]  ;;  %v341_v44 = vld [vmem:[%s5234_s2 + $0x560] sm:$0xff] }
  0x94   : > { %v1358_v61 = vadd.f32 %v1102_v50, %v586_v49  ;;  %v1104_v62 = vmul.f32 %v3335_v10, %v844_v45  ;;  %v589_v63 = vmul.f32 %v3339_v5, %v329_v46  ;;  %v1105_v0 = vmul.f32 %v3335_v10, %v845_v47  ;;  %1613 = vst.msk [vmem:[%s2527_s28 + $0x4d8] sm:$0xff] %vm1457_vm0, %v1356_v55  ;;  %v857_v45 = vld [vmem:[%s5233_s1 + $0x560] sm:$0xff]  ;;  %v342_v50 = vld [vmem:[%s5234_s2 + $0x568] sm:$0xff] }
  0x95   : > { %1614 = vst.msk [vmem:[%s2527_s28 + $0x4e0] sm:$0xff] %vm1457_vm0, %v1357_v56  ;;  %v1359_v4 = vadd.f32 %v1103_v57, %v587_v51  ;;  %v590_v9 = vmul.f32 %v3339_v5, %v330_v52  ;;  %v1106_v6 = vmul.f32 %v3335_v10, %v846_v53  ;;  %v591_v7 = vmul.f32 %v3339_v5, %v331_v54  ;;  %v858_v51 = vld [vmem:[%s5233_s1 + $0x568] sm:$0xff]  ;;  %v343_v52 = vld [vmem:[%s5234_s2 + $0x570] sm:$0xff] }
  0x96   : > { %1615 = vst.msk [vmem:[%s2527_s28 + $0x4e8] sm:$0xff] %vm1457_vm0, %v1358_v61  ;;  %v1360_v13 = vadd.f32 %v1104_v62, %v588_v58  ;;  %v1361_v14 = vadd.f32 %v1105_v0, %v589_v63  ;;  %v1107_v15 = vmul.f32 %v3335_v10, %v847_v59  ;;  %v592_v16 = vmul.f32 %v3339_v5, %v332_v60  ;;  %v859_v57 = vld [vmem:[%s5233_s1 + $0x570] sm:$0xff]  ;;  %v344_v58 = vld [vmem:[%s5234_s2 + $0x578] sm:$0xff]  ;;  %v4193_v62 = vld [vmem:[%s2461_s12 + $0x1] ss:$0 sm:$0xff] }
  0x97   : > { %1616 = vst.msk [vmem:[%s2527_s28 + $0x4f0] sm:$0xff] %vm1457_vm0, %v1359_v4  ;;  %v1362_v19 = vadd.f32 %v1106_v6, %v590_v9  ;;  %v1108_v20 = vmul.f32 %v3335_v10, %v848_v1  ;;  %v593_v21 = vmul.f32 %v3339_v5, %v333_v2  ;;  %v1109_v22 = vmul.f32 %v3335_v10, %v849_v3  ;;  %v860_v0 = vld [vmem:[%s5233_s1 + $0x578] sm:$0xff]  ;;  %v345_v1 = vld [vmem:[%s5234_s2 + $0x580] sm:$0xff]  ;;  %v346_v6 = vld [vmem:[%s5234_s2 + $0x588] sm:$0xff] }
  0x98   : > { %1617 = vst.msk [vmem:[%s2527_s28 + $0x4f8] sm:$0xff] %vm1457_vm0, %v1360_v13  ;;  %1618 = vst.msk [vmem:[%s2527_s28 + $0x500] sm:$0xff] %vm1457_vm0, %v1361_v14  ;;  %v1363_v26 = vadd.f32 %v1107_v15, %v591_v7  ;;  %v594_v27 = vmul.f32 %v3339_v5, %v334_v8  ;;  %v1110_v28 = vmul.f32 %v3335_v10, %v850_v11  ;;  %v861_v2 = vld [vmem:[%s5233_s1 + $0x580] sm:$0xff]  ;;  %v862_v7 = vld [vmem:[%s5233_s1 + $0x588] sm:$0xff] }
  0x99   : > { %v595_v29 = vmul.f32 %v3339_v5, %v335_v12  ;;  %1619 = vst.msk [vmem:[%s2527_s28 + $0x508] sm:$0xff] %vm1457_vm0, %v1362_v19  ;;  %v1364_v33 = vadd.f32 %v1108_v20, %v592_v16  ;;  %v1365_v34 = vadd.f32 %v1109_v22, %v593_v21  ;;  %v1111_v35 = vmul.f32 %v3335_v10, %v851_v17  ;;  %v347_v8 = vld [vmem:[%s5234_s2 + $0x590] sm:$0xff]  ;;  %v348_v16 = vld [vmem:[%s5234_s2 + $0x598] sm:$0xff]  ;;  %v349_v22 = vld [vmem:[%s5234_s2 + $0x5a0] sm:$0xff] }
  0x9a   : > { %v596_v36 = vmul.f32 %v3339_v5, %v336_v18  ;;  %1620 = vst.msk [vmem:[%s2527_s28 + $0x510] sm:$0xff] %vm1457_vm0, %v1363_v26  ;;  %v1366_v39 = vadd.f32 %v1110_v28, %v594_v27  ;;  %v1112_v40 = vmul.f32 %v3335_v10, %v852_v23  ;;  %v597_v41 = vmul.f32 %v3339_v5, %v337_v24  ;;  %v863_v15 = vld [vmem:[%s5233_s1 + $0x590] sm:$0xff]  ;;  %v864_v21 = vld [vmem:[%s5233_s1 + $0x598] sm:$0xff]  ;;  %v865_v23 = vld [vmem:[%s5233_s1 + $0x5a0] sm:$0xff] }
  0x9b   : > { %v1113_v42 = vmul.f32 %v3335_v10, %v853_v25  ;;  %1621 = vst.msk [vmem:[%s2527_s28 + $0x518] sm:$0xff] %vm1457_vm0, %v1364_v33  ;;  %1622 = vst.msk [vmem:[%s2527_s28 + $0x520] sm:$0xff] %vm1457_vm0, %v1365_v34  ;;  %v1367_v46 = vadd.f32 %v1111_v35, %v595_v29  ;;  %v598_v47 = vmul.f32 %v3339_v5, %v338_v30  ;;  %v350_v28 = vld [vmem:[%s5234_s2 + $0x5a8] sm:$0xff]  ;;  %v351_v30 = vld [vmem:[%s5234_s2 + $0x5b0] sm:$0xff] }
  0x9c   : > { %v1114_v48 = vmul.f32 %v3335_v10, %v854_v31  ;;  %v599_v49 = vmul.f32 %v3339_v5, %v339_v32  ;;  %1623 = vst.msk [vmem:[%s2527_s28 + $0x528] sm:$0xff] %vm1457_vm0, %v1366_v39  ;;  %v1368_v53 = vadd.f32 %v1112_v40, %v596_v36  ;;  %v1115_v55 = vmul.f32 %v3335_v10, %v855_v37  ;;  %v866_v29 = vld [vmem:[%s5233_s1 + $0x5a8] sm:$0xff]  ;;  %v867_v35 = vld [vmem:[%s5233_s1 + $0x5b0] sm:$0xff]  ;;  %v352_v36 = vld [vmem:[%s5234_s2 + $0x5b8] sm:$0xff] }
  0x9d   : > { %v1369_v54 = vadd.f32 %v1113_v42, %v597_v41  ;;  %v600_v56 = vmul.f32 %v3339_v5, %v340_v38  ;;  %1624 = vst.msk [vmem:[%s2527_s28 + $0x530] sm:$0xff] %vm1457_vm0, %v1367_v46  ;;  %v1116_v60 = vmul.f32 %v3335_v10, %v856_v43  ;;  %v601_v61 = vmul.f32 %v3339_v5, %v341_v44  ;;  %v4210_v5 = vld [vmem:[%s2461_s12] ss:$0 sm:$0xff]  ;;  %v868_v41 = vld [vmem:[%s5233_s1 + $0x5b8] sm:$0xff]  ;;  %s5033_s12 = scalar_lea.vmem (%p2432_p4), %s5235_s3, %s2207_s10  }
  0x9e   : > { %v1370_v59 = vadd.f32 %v1114_v48, %v598_v47  ;;  %v1117_v63 = vmul.f32 %v4193_v62, %v857_v45  ;;  %1625 = vst.msk [vmem:[%s2527_s28 + $0x538] sm:$0xff] %vm1457_vm0, %v1368_v53  ;;  %v1371_v10 = vadd.f32 %v1115_v55, %v599_v49  ;;  %v602_v3 = vmul.f32 %v4210_v5, %v342_v50  ;;  %v353_v42 = vld [vmem:[%s5234_s2 + $0x5c0] sm:$0xff]  ;;  %v354_v48 = vld [vmem:[%s5234_s2 + $0x5c8] sm:$0xff]  ;;  %v355_v50 = vld [vmem:[%s5234_s2 + $0x5d0] sm:$0xff] }
  0x9f   : > { %1626 = vst.msk [vmem:[%s2527_s28 + $0x540] sm:$0xff] %vm1457_vm0, %v1369_v54  ;;  %v1118_v4 = vmul.f32 %v4193_v62, %v858_v51  ;;  %v603_v9 = vmul.f32 %v4210_v5, %v343_v52  ;;  %v1372_v11 = vadd.f32 %v1116_v60, %v600_v56  ;;  %v1119_v13 = vmul.f32 %v4193_v62, %v859_v57  ;;  %v869_v43 = vld [vmem:[%s5233_s1 + $0x5c0] sm:$0xff]  ;;  %v870_v49 = vld [vmem:[%s5233_s1 + $0x5c8] sm:$0xff]  ;;  %v871_v55 = vld [vmem:[%s5233_s1 + $0x5d0] sm:$0xff] }
  0xa0   : > { %1627 = vst.msk [vmem:[%s2527_s28 + $0x548] sm:$0xff] %vm1457_vm0, %v1370_v59  ;;  %v1373_v12 = vadd.f32 %v1117_v63, %v601_v61  ;;  %v604_v14 = vmul.f32 %v4210_v5, %v344_v58  ;;  %1628 = vst.msk [vmem:[%s2527_s28 + $0x550] sm:$0xff] %vm1457_vm0, %v1371_v10  ;;  %v1120_v18 = vmul.f32 %v4193_v62, %v860_v0  ;;  %v356_v56 = vld [vmem:[%s5234_s2 + $0x5d8] sm:$0xff]  ;;  %v357_v63 = vld [vmem:[%s5234_s2 + $0x5e0] sm:$0xff] }
  0xa1   : > { %v1374_v17 = vadd.f32 %v1118_v4, %v602_v3  ;;  %v605_v19 = vmul.f32 %v4210_v5, %v345_v1  ;;  %v1121_v20 = vmul.f32 %v4193_v62, %v861_v2  ;;  %1629 = vst.msk [vmem:[%s2527_s28 + $0x558] sm:$0xff] %vm1457_vm0, %v1372_v11  ;;  %v1375_v24 = vadd.f32 %v1119_v13, %v603_v9  ;;  %v872_v61 = vld [vmem:[%s5233_s1 + $0x5d8] sm:$0xff]  ;;  %v873_v0 = vld [vmem:[%s5233_s1 + $0x5e0] sm:$0xff]  ;;  %v358_v4 = vld [vmem:[%s5234_s2 + $0x5e8] sm:$0xff] }
  0xa2   : > { %1630 = vst.msk [vmem:[%s2527_s28 + $0x560] sm:$0xff] %vm1457_vm0, %v1373_v12  ;;  %v606_v25 = vmul.f32 %v4210_v5, %v346_v6  ;;  %v1122_v26 = vmul.f32 %v4193_v62, %v862_v7  ;;  %v607_v27 = vmul.f32 %v4210_v5, %v347_v8  ;;  %v1376_v31 = vadd.f32 %v1120_v18, %v604_v14  ;;  %v874_v9 = vld [vmem:[%s5233_s1 + $0x5e8] sm:$0xff]  ;;  %v359_v6 = vld [vmem:[%s5234_s2 + $0x5f0] sm:$0xff]  ;;  %v360_v14 = vld [vmem:[%s5234_s2 + $0x5f8] sm:$0xff] }
  0xa3   : > { %1631 = vst.msk [vmem:[%s2527_s28 + $0x568] sm:$0xff] %vm1457_vm0, %v1374_v17  ;;  %v1377_v32 = vadd.f32 %v1121_v20, %v605_v19  ;;  %v1123_v33 = vmul.f32 %v4193_v62, %v863_v15  ;;  %v608_v34 = vmul.f32 %v4210_v5, %v348_v16  ;;  %1632 = vst.msk [vmem:[%s2527_s28 + $0x570] sm:$0xff] %vm1457_vm0, %v1375_v24  ;;  %v875_v13 = vld [vmem:[%s5233_s1 + $0x5f0] sm:$0xff]  ;;  %v876_v19 = vld [vmem:[%s5233_s1 + $0x5f8] sm:$0xff] }
  0xa4   : > { %v1378_v37 = vadd.f32 %v1122_v26, %v606_v25  ;;  %v1124_v38 = vmul.f32 %v4193_v62, %v864_v21  ;;  %v609_v39 = vmul.f32 %v4210_v5, %v349_v22  ;;  %v1125_v40 = vmul.f32 %v4193_v62, %v865_v23  ;;  %1633 = vst.msk [vmem:[%s2527_s28 + $0x578] sm:$0xff] %vm1457_vm0, %v1376_v31  ;;  %v361_v20 = vld [vmem:[%s5234_s2 + $0x600] sm:$0xff]  ;;  %v362_v26 = vld [vmem:[%s5234_s2 + $0x608] sm:$0xff] }
  0xa5   : > { %1634 = vst.msk [vmem:[%s2527_s28 + $0x580] sm:$0xff] %vm1457_vm0, %v1377_v32  ;;  %v1379_v44 = vadd.f32 %v1123_v33, %v607_v27  ;;  %v610_v45 = vmul.f32 %v4210_v5, %v350_v28  ;;  %v1126_v46 = vmul.f32 %v4193_v62, %v866_v29  ;;  %v611_v47 = vmul.f32 %v4210_v5, %v351_v30  ;;  %v877_v21 = vld [vmem:[%s5233_s1 + $0x600] sm:$0xff]  ;;  %v878_v27 = vld [vmem:[%s5233_s1 + $0x608] sm:$0xff]  ;;  %v363_v28 = vld [vmem:[%s5234_s2 + $0x610] sm:$0xff] }
  0xa6   : > { %1635 = vst.msk [vmem:[%s2527_s28 + $0x588] sm:$0xff] %vm1457_vm0, %v1378_v37  ;;  %v1380_v51 = vadd.f32 %v1124_v38, %v608_v34  ;;  %v1381_v52 = vadd.f32 %v1125_v40, %v609_v39  ;;  %v1127_v53 = vmul.f32 %v4193_v62, %v867_v35  ;;  %v612_v54 = vmul.f32 %v4210_v5, %v352_v36  ;;  %v879_v33 = vld [vmem:[%s5233_s1 + $0x610] sm:$0xff]  ;;  %v364_v34 = vld [vmem:[%s5234_s2 + $0x618] sm:$0xff]  ;;  %v365_v40 = vld [vmem:[%s5234_s2 + $0x620] sm:$0xff] }
  0xa7   : > { %1636 = vst.msk [vmem:[%s2527_s28 + $0x590] sm:$0xff] %vm1457_vm0, %v1379_v44  ;;  %v1382_v57 = vadd.f32 %v1126_v46, %v610_v45  ;;  %v1128_v58 = vmul.f32 %v4193_v62, %v868_v41  ;;  %v613_v59 = vmul.f32 %v4210_v5, %v353_v42  ;;  %v1129_v60 = vmul.f32 %v4193_v62, %v869_v43  ;;  %v880_v39 = vld [vmem:[%s5233_s1 + $0x618] sm:$0xff]  ;;  %v881_v41 = vld [vmem:[%s5233_s1 + $0x620] sm:$0xff]  ;;  %v366_v46 = vld [vmem:[%s5234_s2 + $0x628] sm:$0xff] }
  0xa8   : > { %1637 = vst.msk [vmem:[%s2527_s28 + $0x598] sm:$0xff] %vm1457_vm0, %v1380_v51  ;;  %1638 = vst.msk [vmem:[%s2527_s28 + $0x5a0] sm:$0xff] %vm1457_vm0, %v1381_v52  ;;  %v1383_v1 = vadd.f32 %v1127_v53, %v611_v47  ;;  %v614_v2 = vmul.f32 %v4210_v5, %v354_v48  ;;  %v1130_v10 = vmul.f32 %v4193_v62, %v870_v49  ;;  %v882_v47 = vld [vmem:[%s5233_s1 + $0x628] sm:$0xff]  ;;  %v367_v48 = vld [vmem:[%s5234_s2 + $0x630] sm:$0xff] }
  0xa9   : > { %v615_v3 = vmul.f32 %v4210_v5, %v355_v50  ;;  %1639 = vst.msk [vmem:[%s2527_s28 + $0x5a8] sm:$0xff] %vm1457_vm0, %v1382_v57  ;;  %v1384_v7 = vadd.f32 %v1128_v58, %v612_v54  ;;  %v1385_v8 = vadd.f32 %v1129_v60, %v613_v59  ;;  %v1131_v11 = vmul.f32 %v4193_v62, %v871_v55  ;;  %v883_v53 = vld [vmem:[%s5233_s1 + $0x630] sm:$0xff]  ;;  %v368_v54 = vld [vmem:[%s5234_s2 + $0x638] sm:$0xff]  ;;  %v369_v60 = vld [vmem:[%s5234_s2 + $0x640] sm:$0xff] }
  0xaa   : > { %v616_v12 = vmul.f32 %v4210_v5, %v356_v56  ;;  %1640 = vst.msk [vmem:[%s2527_s28 + $0x5b0] sm:$0xff] %vm1457_vm0, %v1383_v1  ;;  %v1386_v15 = vadd.f32 %v1130_v10, %v614_v2  ;;  %v1132_v16 = vmul.f32 %v4193_v62, %v872_v61  ;;  %v617_v17 = vmul.f32 %v4210_v5, %v357_v63  ;;  %v884_v59 = vld [vmem:[%s5233_s1 + $0x638] sm:$0xff]  ;;  %v885_v61 = vld [vmem:[%s5233_s1 + $0x640] sm:$0xff]  ;;  %v370_v10 = vld [vmem:[%s5234_s2 + $0x648] sm:$0xff] }
  0xab   : > { %v1133_v18 = vmul.f32 %v4193_v62, %v873_v0  ;;  %1641 = vst.msk [vmem:[%s2527_s28 + $0x5b8] sm:$0xff] %vm1457_vm0, %v1384_v7  ;;  %1642 = vst.msk [vmem:[%s2527_s28 + $0x5c0] sm:$0xff] %vm1457_vm0, %v1385_v8  ;;  %v1387_v22 = vadd.f32 %v1131_v11, %v615_v3  ;;  %v618_v23 = vmul.f32 %v4210_v5, %v358_v4  ;;  %v886_v3 = vld [vmem:[%s5233_s1 + $0x648] sm:$0xff]  ;;  %v371_v4 = vld [vmem:[%s5234_s2 + $0x650] sm:$0xff] }
  0xac   : > { %v1134_v24 = vmul.f32 %v4193_v62, %v874_v9  ;;  %v619_v25 = vmul.f32 %v4210_v5, %v359_v6  ;;  %1643 = vst.msk [vmem:[%s2527_s28 + $0x5c8] sm:$0xff] %vm1457_vm0, %v1386_v15  ;;  %v1388_v29 = vadd.f32 %v1132_v16, %v616_v12  ;;  %v1135_v31 = vmul.f32 %v4193_v62, %v875_v13  ;;  %v887_v11 = vld [vmem:[%s5233_s1 + $0x650] sm:$0xff]  ;;  %v372_v12 = vld [vmem:[%s5234_s2 + $0x658] sm:$0xff] }
  0xad   : > { %v1389_v30 = vadd.f32 %v1133_v18, %v617_v17  ;;  %v620_v32 = vmul.f32 %v4210_v5, %v360_v14  ;;  %1644 = vst.msk [vmem:[%s2527_s28 + $0x5d0] sm:$0xff] %vm1457_vm0, %v1387_v22  ;;  %v1136_v36 = vmul.f32 %v4193_v62, %v876_v19  ;;  %v621_v37 = vmul.f32 %v4210_v5, %v361_v20  ;;  %v888_v17 = vld [vmem:[%s5233_s1 + $0x658] sm:$0xff]  ;;  %v373_v18 = vld [vmem:[%s5234_s2 + $0x660] sm:$0xff] }
  0xae   : > { %v1390_v35 = vadd.f32 %v1134_v24, %v618_v23  ;;  %v1137_v38 = vmul.f32 %v4193_v62, %v877_v21  ;;  %1645 = vst.msk [vmem:[%s2527_s28 + $0x5d8] sm:$0xff] %vm1457_vm0, %v1388_v29  ;;  %v1391_v42 = vadd.f32 %v1135_v31, %v619_v25  ;;  %v622_v43 = vmul.f32 %v4210_v5, %v362_v26  ;;  %v889_v19 = vld [vmem:[%s5233_s1 + $0x660] sm:$0xff]  ;;  %v374_v24 = vld [vmem:[%s5234_s2 + $0x668] sm:$0xff]  ;;  %v375_v26 = vld [vmem:[%s5234_s2 + $0x670] sm:$0xff] }
  0xaf   : > { %1646 = vst.msk [vmem:[%s2527_s28 + $0x5e0] sm:$0xff] %vm1457_vm0, %v1389_v30  ;;  %v1138_v44 = vmul.f32 %v4193_v62, %v878_v27  ;;  %v623_v45 = vmul.f32 %v4210_v5, %v363_v28  ;;  %v1392_v49 = vadd.f32 %v1136_v36, %v620_v32  ;;  %v1139_v51 = vmul.f32 %v4193_v62, %v879_v33  ;;  %v890_v25 = vld [vmem:[%s5233_s1 + $0x668] sm:$0xff]  ;;  %v891_v31 = vld [vmem:[%s5233_s1 + $0x670] sm:$0xff]  ;;  %v376_v32 = vld [vmem:[%s5234_s2 + $0x678] sm:$0xff] }
  0xb0   : > { %1647 = vst.msk [vmem:[%s2527_s28 + $0x5e8] sm:$0xff] %vm1457_vm0, %v1390_v35  ;;  %v1393_v50 = vadd.f32 %v1137_v38, %v621_v37  ;;  %v624_v52 = vmul.f32 %v4210_v5, %v364_v34  ;;  %1648 = vst.msk [vmem:[%s2527_s28 + $0x5f0] sm:$0xff] %vm1457_vm0, %v1391_v42  ;;  %v1140_v56 = vmul.f32 %v4193_v62, %v880_v39  ;;  %v892_v37 = vld [vmem:[%s5233_s1 + $0x678] sm:$0xff]  ;;  %v377_v38 = vld [vmem:[%s5234_s2 + $0x680] sm:$0xff] }
  0xb1   : > { %v1394_v55 = vadd.f32 %v1138_v44, %v622_v43  ;;  %v625_v57 = vmul.f32 %v4210_v5, %v365_v40  ;;  %v1141_v58 = vmul.f32 %v4193_v62, %v881_v41  ;;  %1649 = vst.msk [vmem:[%s2527_s28 + $0x5f8] sm:$0xff] %vm1457_vm0, %v1392_v49  ;;  %v1395_v63 = vadd.f32 %v1139_v51, %v623_v45  ;;  %v893_v39 = vld [vmem:[%s5233_s1 + $0x680] sm:$0xff]  ;;  %v378_v44 = vld [vmem:[%s5234_s2 + $0x688] sm:$0xff]  ;;  %v895_v51 = vld [vmem:[%s5233_s1 + $0x690] sm:$0xff] }
  0xb2   : > { %1650 = vst.msk [vmem:[%s2527_s28 + $0x600] sm:$0xff] %vm1457_vm0, %v1393_v50  ;;  %v626_v0 = vmul.f32 %v4210_v5, %v366_v46  ;;  %v1142_v1 = vmul.f32 %v4193_v62, %v882_v47  ;;  %v627_v2 = vmul.f32 %v4210_v5, %v367_v48  ;;  %v1396_v9 = vadd.f32 %v1140_v56, %v624_v52  ;;  %v894_v45 = vld [vmem:[%s5233_s1 + $0x688] sm:$0xff]  ;;  %v379_v46 = vld [vmem:[%s5234_s2 + $0x690] sm:$0xff]  ;;  %v380_v52 = vld [vmem:[%s5234_s2 + $0x698] sm:$0xff] }
  0xb3   : > { %1651 = vst.msk [vmem:[%s2527_s28 + $0x608] sm:$0xff] %vm1457_vm0, %v1394_v55  ;;  %v1397_v6 = vadd.f32 %v1141_v58, %v625_v57  ;;  %v1143_v7 = vmul.f32 %v4193_v62, %v883_v53  ;;  %v628_v8 = vmul.f32 %v4210_v5, %v368_v54  ;;  %1652 = vst.msk [vmem:[%s2527_s28 + $0x610] sm:$0xff] %vm1457_vm0, %v1395_v63  ;;  %v896_v57 = vld [vmem:[%s5233_s1 + $0x698] sm:$0xff]  ;;  %v381_v58 = vld [vmem:[%s5234_s2 + $0x6a0] sm:$0xff] }
  0xb4   : > { %v1398_v13 = vadd.f32 %v1142_v1, %v626_v0  ;;  %v1144_v14 = vmul.f32 %v4193_v62, %v884_v59  ;;  %v629_v15 = vmul.f32 %v4210_v5, %v369_v60  ;;  %v1145_v16 = vmul.f32 %v4193_v62, %v885_v61  ;;  %1653 = vst.msk [vmem:[%s2527_s28 + $0x618] sm:$0xff] %vm1457_vm0, %v1396_v9  ;;  %v897_v59 = vld [vmem:[%s5233_s1 + $0x6a0] sm:$0xff]  ;;  %v382_v1 = vld [vmem:[%s5234_s2 + $0x6a8] sm:$0xff] }
  0xb5   : > { %1654 = vst.msk [vmem:[%s2527_s28 + $0x620] sm:$0xff] %vm1457_vm0, %v1397_v6  ;;  %v1399_v20 = vadd.f32 %v1143_v7, %v627_v2  ;;  %v630_v21 = vmul.f32 %v4210_v5, %v370_v10  ;;  %v1146_v22 = vmul.f32 %v4193_v62, %v886_v3  ;;  %v631_v23 = vmul.f32 %v4210_v5, %v371_v4  ;;  %v898_v2 = vld [vmem:[%s5233_s1 + $0x6a8] sm:$0xff]  ;;  %v383_v10 = vld [vmem:[%s5234_s2 + $0x6b0] sm:$0xff] }
  0xb6   : > { %1655 = vst.msk [vmem:[%s2527_s28 + $0x628] sm:$0xff] %vm1457_vm0, %v1398_v13  ;;  %v1400_v27 = vadd.f32 %v1144_v14, %v628_v8  ;;  %v1401_v28 = vadd.f32 %v1145_v16, %v629_v15  ;;  %v1147_v29 = vmul.f32 %v4193_v62, %v887_v11  ;;  %v632_v30 = vmul.f32 %v4210_v5, %v372_v12  ;;  %v899_v7 = vld [vmem:[%s5233_s1 + $0x6b0] sm:$0xff]  ;;  %v384_v8 = vld [vmem:[%s5234_s2 + $0x6b8] sm:$0xff]  ;;  %v385_v16 = vld [vmem:[%s5234_s2 + $0x6c0] sm:$0xff] }
  0xb7   : > { %1656 = vst.msk [vmem:[%s2527_s28 + $0x630] sm:$0xff] %vm1457_vm0, %v1399_v20  ;;  %v1402_v33 = vadd.f32 %v1146_v22, %v630_v21  ;;  %v1148_v34 = vmul.f32 %v4193_v62, %v888_v17  ;;  %v633_v35 = vmul.f32 %v4210_v5, %v373_v18  ;;  %v1149_v36 = vmul.f32 %v4193_v62, %v889_v19  ;;  %v900_v15 = vld [vmem:[%s5233_s1 + $0x6b8] sm:$0xff]  ;;  %v901_v17 = vld [vmem:[%s5233_s1 + $0x6c0] sm:$0xff]  ;;  %v386_v22 = vld [vmem:[%s5234_s2 + $0x6c8] sm:$0xff] }
  0xb8   : > { %1657 = vst.msk [vmem:[%s2527_s28 + $0x638] sm:$0xff] %vm1457_vm0, %v1400_v27  ;;  %1658 = vst.msk [vmem:[%s2527_s28 + $0x640] sm:$0xff] %vm1457_vm0, %v1401_v28  ;;  %v1403_v40 = vadd.f32 %v1147_v29, %v631_v23  ;;  %v634_v41 = vmul.f32 %v4210_v5, %v374_v24  ;;  %v1150_v42 = vmul.f32 %v4193_v62, %v890_v25  ;;  %v902_v23 = vld [vmem:[%s5233_s1 + $0x6c8] sm:$0xff]  ;;  %v387_v24 = vld [vmem:[%s5234_s2 + $0x6d0] sm:$0xff] }
  0xb9   : > { %v635_v43 = vmul.f32 %v4210_v5, %v375_v26  ;;  %1659 = vst.msk [vmem:[%s2527_s28 + $0x648] sm:$0xff] %vm1457_vm0, %v1402_v33  ;;  %v1404_v47 = vadd.f32 %v1148_v34, %v632_v30  ;;  %v1405_v48 = vadd.f32 %v1149_v36, %v633_v35  ;;  %v1151_v49 = vmul.f32 %v4193_v62, %v891_v31  ;;  %v903_v29 = vld [vmem:[%s5233_s1 + $0x6d0] sm:$0xff]  ;;  %v388_v30 = vld [vmem:[%s5234_s2 + $0x6d8] sm:$0xff]  ;;  %v389_v36 = vld [vmem:[%s5234_s2 + $0x6e0] sm:$0xff] }
  0xba   : > { %v636_v50 = vmul.f32 %v4210_v5, %v376_v32  ;;  %1660 = vst.msk [vmem:[%s2527_s28 + $0x650] sm:$0xff] %vm1457_vm0, %v1403_v40  ;;  %v1406_v53 = vadd.f32 %v1150_v42, %v634_v41  ;;  %v1152_v54 = vmul.f32 %v4193_v62, %v892_v37  ;;  %v637_v55 = vmul.f32 %v4210_v5, %v377_v38  ;;  %v904_v35 = vld [vmem:[%s5233_s1 + $0x6d8] sm:$0xff]  ;;  %v905_v37 = vld [vmem:[%s5233_s1 + $0x6e0] sm:$0xff]  ;;  %v390_v42 = vld [vmem:[%s5234_s2 + $0x6e8] sm:$0xff] }
  0xbb   : > { %v1153_v56 = vmul.f32 %v4193_v62, %v893_v39  ;;  %1661 = vst.msk [vmem:[%s2527_s28 + $0x658] sm:$0xff] %vm1457_vm0, %v1404_v47  ;;  %1662 = vst.msk [vmem:[%s2527_s28 + $0x660] sm:$0xff] %vm1457_vm0, %v1405_v48  ;;  %v1407_v60 = vadd.f32 %v1151_v49, %v635_v43  ;;  %v638_v61 = vmul.f32 %v4210_v5, %v378_v44  ;;  %v906_v43 = vld [vmem:[%s5233_s1 + $0x6e8] sm:$0xff]  ;;  %v391_v44 = vld [vmem:[%s5234_s2 + $0x6f0] sm:$0xff] }
  0xbc   : > { %v1154_v63 = vmul.f32 %v4193_v62, %v894_v45  ;;  %v639_v0 = vmul.f32 %v4210_v5, %v379_v46  ;;  %1663 = vst.msk [vmem:[%s2527_s28 + $0x668] sm:$0xff] %vm1457_vm0, %v1406_v53  ;;  %v1408_v3 = vadd.f32 %v1152_v54, %v636_v50  ;;  %v1155_v9 = vmul.f32 %v4193_v62, %v895_v51  ;;  %v907_v49 = vld [vmem:[%s5233_s1 + $0x6f0] sm:$0xff]  ;;  %v392_v50 = vld [vmem:[%s5234_s2 + $0x6f8] sm:$0xff] }
  0xbd   : > { %v1409_v4 = vadd.f32 %v1153_v56, %v637_v55  ;;  %v640_v6 = vmul.f32 %v4210_v5, %v380_v52  ;;  %1664 = vst.msk [vmem:[%s2527_s28 + $0x670] sm:$0xff] %vm1457_vm0, %v1407_v60  ;;  %v1156_v12 = vmul.f32 %v4193_v62, %v896_v57  ;;  %v641_v13 = vmul.f32 %v4210_v5, %v381_v58  ;;  %v908_v55 = vld [vmem:[%s5233_s1 + $0x6f8] sm:$0xff]  ;;  %v393_v56 = vld [vmem:[%s5234_s2 + $0x700] sm:$0xff] }
  0xbe   : > { %v1410_v11 = vadd.f32 %v1154_v63, %v638_v61  ;;  %v1157_v14 = vmul.f32 %v4193_v62, %v897_v59  ;;  %1665 = vst.msk [vmem:[%s2527_s28 + $0x678] sm:$0xff] %vm1457_vm0, %v1408_v3  ;;  %v1411_v18 = vadd.f32 %v1155_v9, %v639_v0  ;;  %v642_v19 = vmul.f32 %v4210_v5, %v382_v1  ;;  %v909_v57 = vld [vmem:[%s5233_s1 + $0x700] sm:$0xff]  ;;  %v394_v63 = vld [vmem:[%s5234_s2 + $0x708] sm:$0xff]  ;;  %v395_v1 = vld [vmem:[%s5234_s2 + $0x710] sm:$0xff] }
  0xbf   : > { %1666 = vst.msk [vmem:[%s2527_s28 + $0x680] sm:$0xff] %vm1457_vm0, %v1409_v4  ;;  %v1158_v20 = vmul.f32 %v4193_v62, %v898_v2  ;;  %v643_v21 = vmul.f32 %v4210_v5, %v383_v10  ;;  %v1412_v25 = vadd.f32 %v1156_v12, %v640_v6  ;;  %v1159_v27 = vmul.f32 %v4193_v62, %v899_v7  ;;  %v910_v0 = vld [vmem:[%s5233_s1 + $0x708] sm:$0xff]  ;;  %v911_v9 = vld [vmem:[%s5233_s1 + $0x710] sm:$0xff]  ;;  %v396_v6 = vld [vmem:[%s5234_s2 + $0x718] sm:$0xff] }
  0xc0   : > { %1667 = vst.msk [vmem:[%s2527_s28 + $0x688] sm:$0xff] %vm1457_vm0, %v1410_v11  ;;  %v1413_v26 = vadd.f32 %v1157_v14, %v641_v13  ;;  %v644_v28 = vmul.f32 %v4210_v5, %v384_v8  ;;  %1668 = vst.msk [vmem:[%s2527_s28 + $0x690] sm:$0xff] %vm1457_vm0, %v1411_v18  ;;  %v1160_v32 = vmul.f32 %v4193_v62, %v900_v15  ;;  %v912_v13 = vld [vmem:[%s5233_s1 + $0x718] sm:$0xff]  ;;  %v397_v14 = vld [vmem:[%s5234_s2 + $0x720] sm:$0xff] }
  0xc1   : > { %v1414_v31 = vadd.f32 %v1158_v20, %v642_v19  ;;  %v645_v33 = vmul.f32 %v4210_v5, %v385_v16  ;;  %v1161_v34 = vmul.f32 %v4193_v62, %v901_v17  ;;  %1669 = vst.msk [vmem:[%s2527_s28 + $0x698] sm:$0xff] %vm1457_vm0, %v1412_v25  ;;  %v1415_v38 = vadd.f32 %v1159_v27, %v643_v21  ;;  %v913_v15 = vld [vmem:[%s5233_s1 + $0x720] sm:$0xff]  ;;  %v398_v20 = vld [vmem:[%s5234_s2 + $0x728] sm:$0xff]  ;;  %v915_v27 = vld [vmem:[%s5233_s1 + $0x730] sm:$0xff] }
  0xc2   : > { %1670 = vst.msk [vmem:[%s2527_s28 + $0x6a0] sm:$0xff] %vm1457_vm0, %v1413_v26  ;;  %v646_v39 = vmul.f32 %v4210_v5, %v386_v22  ;;  %v1162_v40 = vmul.f32 %v4193_v62, %v902_v23  ;;  %v647_v41 = vmul.f32 %v4210_v5, %v387_v24  ;;  %v1416_v45 = vadd.f32 %v1160_v32, %v644_v28  ;;  %v914_v21 = vld [vmem:[%s5233_s1 + $0x728] sm:$0xff]  ;;  %v399_v22 = vld [vmem:[%s5234_s2 + $0x730] sm:$0xff]  ;;  %v400_v28 = vld [vmem:[%s5234_s2 + $0x738] sm:$0xff] }
  0xc3   : > { %1671 = vst.msk [vmem:[%s2527_s28 + $0x6a8] sm:$0xff] %vm1457_vm0, %v1414_v31  ;;  %v1417_v46 = vadd.f32 %v1161_v34, %v645_v33  ;;  %v1163_v47 = vmul.f32 %v4193_v62, %v903_v29  ;;  %v648_v48 = vmul.f32 %v4210_v5, %v388_v30  ;;  %1672 = vst.msk [vmem:[%s2527_s28 + $0x6b0] sm:$0xff] %vm1457_vm0, %v1415_v38  ;;  %v916_v33 = vld [vmem:[%s5233_s1 + $0x738] sm:$0xff]  ;;  %v401_v34 = vld [vmem:[%s5234_s2 + $0x740] sm:$0xff] }
  0xc4   : > { %v1418_v51 = vadd.f32 %v1162_v40, %v646_v39  ;;  %v1164_v52 = vmul.f32 %v4193_v62, %v904_v35  ;;  %v649_v53 = vmul.f32 %v4210_v5, %v389_v36  ;;  %v1165_v54 = vmul.f32 %v4193_v62, %v905_v37  ;;  %1673 = vst.msk [vmem:[%s2527_s28 + $0x6b8] sm:$0xff] %vm1457_vm0, %v1416_v45  ;;  %v917_v35 = vld [vmem:[%s5233_s1 + $0x740] sm:$0xff]  ;;  %v402_v40 = vld [vmem:[%s5234_s2 + $0x748] sm:$0xff] }
  0xc5   : > { %1674 = vst.msk [vmem:[%s2527_s28 + $0x6c0] sm:$0xff] %vm1457_vm0, %v1417_v46  ;;  %v1419_v58 = vadd.f32 %v1163_v47, %v647_v41  ;;  %v650_v59 = vmul.f32 %v4210_v5, %v390_v42  ;;  %v1166_v60 = vmul.f32 %v4193_v62, %v906_v43  ;;  %v651_v61 = vmul.f32 %v4210_v5, %v391_v44  ;;  %v918_v41 = vld [vmem:[%s5233_s1 + $0x748] sm:$0xff]  ;;  %v403_v42 = vld [vmem:[%s5234_s2 + $0x750] sm:$0xff] }
  0xc6   : > { %1675 = vst.msk [vmem:[%s2527_s28 + $0x6c8] sm:$0xff] %vm1457_vm0, %v1418_v51  ;;  %v1420_v2 = vadd.f32 %v1164_v52, %v648_v48  ;;  %v1421_v10 = vadd.f32 %v1165_v54, %v649_v53  ;;  %v1167_v3 = vmul.f32 %v4193_v62, %v907_v49  ;;  %v652_v4 = vmul.f32 %v4210_v5, %v392_v50  ;;  %v919_v47 = vld [vmem:[%s5233_s1 + $0x750] sm:$0xff]  ;;  %v404_v48 = vld [vmem:[%s5234_s2 + $0x758] sm:$0xff]  ;;  %v405_v54 = vld [vmem:[%s5234_s2 + $0x760] sm:$0xff] }
  0xc7   : > { %1676 = vst.msk [vmem:[%s2527_s28 + $0x6d0] sm:$0xff] %vm1457_vm0, %v1419_v58  ;;  %v1422_v7 = vadd.f32 %v1166_v60, %v650_v59  ;;  %v1168_v8 = vmul.f32 %v4193_v62, %v908_v55  ;;  %v653_v11 = vmul.f32 %v4210_v5, %v393_v56  ;;  %v1169_v12 = vmul.f32 %v4193_v62, %v909_v57  ;;  %v920_v53 = vld [vmem:[%s5233_s1 + $0x758] sm:$0xff]  ;;  %v921_v55 = vld [vmem:[%s5233_s1 + $0x760] sm:$0xff]  ;;  %v406_v60 = vld [vmem:[%s5234_s2 + $0x768] sm:$0xff] }
  0xc8   : > { %1677 = vst.msk [vmem:[%s2527_s28 + $0x6d8] sm:$0xff] %vm1457_vm0, %v1420_v2  ;;  %1678 = vst.msk [vmem:[%s2527_s28 + $0x6e0] sm:$0xff] %vm1457_vm0, %v1421_v10  ;;  %v1423_v16 = vadd.f32 %v1167_v3, %v651_v61  ;;  %v654_v17 = vmul.f32 %v4210_v5, %v394_v63  ;;  %v1170_v18 = vmul.f32 %v4193_v62, %v910_v0  ;;  %v922_v61 = vld [vmem:[%s5233_s1 + $0x768] sm:$0xff]  ;;  %v407_v63 = vld [vmem:[%s5234_s2 + $0x770] sm:$0xff] }
  0xc9   : > { %v655_v19 = vmul.f32 %v4210_v5, %v395_v1  ;;  %1679 = vst.msk [vmem:[%s2527_s28 + $0x6e8] sm:$0xff] %vm1457_vm0, %v1422_v7  ;;  %v1424_v23 = vadd.f32 %v1168_v8, %v652_v4  ;;  %v1425_v24 = vadd.f32 %v1169_v12, %v653_v11  ;;  %v1171_v25 = vmul.f32 %v4193_v62, %v911_v9  ;;  %v923_v3 = vld [vmem:[%s5233_s1 + $0x770] sm:$0xff]  ;;  %v408_v4 = vld [vmem:[%s5234_s2 + $0x778] sm:$0xff]  ;;  %v409_v12 = vld [vmem:[%s5234_s2 + $0x780] sm:$0xff] }
  0xca   : > { %v656_v26 = vmul.f32 %v4210_v5, %v396_v6  ;;  %1680 = vst.msk [vmem:[%s2527_s28 + $0x6f0] sm:$0xff] %vm1457_vm0, %v1423_v16  ;;  %v1426_v29 = vadd.f32 %v1170_v18, %v654_v17  ;;  %v1172_v30 = vmul.f32 %v4193_v62, %v912_v13  ;;  %v657_v31 = vmul.f32 %v4210_v5, %v397_v14  ;;  %v924_v11 = vld [vmem:[%s5233_s1 + $0x778] sm:$0xff]  ;;  %v925_v13 = vld [vmem:[%s5233_s1 + $0x780] sm:$0xff]  ;;  %v410_v18 = vld [vmem:[%s5234_s2 + $0x788] sm:$0xff] }
  0xcb   : > { %v1173_v32 = vmul.f32 %v4193_v62, %v913_v15  ;;  %1681 = vst.msk [vmem:[%s2527_s28 + $0x6f8] sm:$0xff] %vm1457_vm0, %v1424_v23  ;;  %1682 = vst.msk [vmem:[%s2527_s28 + $0x700] sm:$0xff] %vm1457_vm0, %v1425_v24  ;;  %v1427_v36 = vadd.f32 %v1171_v25, %v655_v19  ;;  %v658_v37 = vmul.f32 %v4210_v5, %v398_v20  ;;  %v926_v19 = vld [vmem:[%s5233_s1 + $0x788] sm:$0xff]  ;;  %v411_v20 = vld [vmem:[%s5234_s2 + $0x790] sm:$0xff] }
  0xcc   : > { %v1174_v38 = vmul.f32 %v4193_v62, %v914_v21  ;;  %v659_v39 = vmul.f32 %v4210_v5, %v399_v22  ;;  %1683 = vst.msk [vmem:[%s2527_s28 + $0x708] sm:$0xff] %vm1457_vm0, %v1426_v29  ;;  %v1428_v43 = vadd.f32 %v1172_v30, %v656_v26  ;;  %v1175_v45 = vmul.f32 %v4193_v62, %v915_v27  ;;  %v927_v25 = vld [vmem:[%s5233_s1 + $0x790] sm:$0xff]  ;;  %v412_v26 = vld [vmem:[%s5234_s2 + $0x798] sm:$0xff] }
  0xcd   : > { %v1429_v44 = vadd.f32 %v1173_v32, %v657_v31  ;;  %v660_v46 = vmul.f32 %v4210_v5, %v400_v28  ;;  %1684 = vst.msk [vmem:[%s2527_s28 + $0x710] sm:$0xff] %vm1457_vm0, %v1427_v36  ;;  %v1176_v50 = vmul.f32 %v4193_v62, %v916_v33  ;;  %v661_v51 = vmul.f32 %v4210_v5, %v401_v34  ;;  %v928_v31 = vld [vmem:[%s5233_s1 + $0x798] sm:$0xff]  ;;  %v413_v32 = vld [vmem:[%s5234_s2 + $0x7a0] sm:$0xff] }
  0xce   : > { %v1430_v49 = vadd.f32 %v1174_v38, %v658_v37  ;;  %v1177_v52 = vmul.f32 %v4193_v62, %v917_v35  ;;  %1685 = vst.msk [vmem:[%s2527_s28 + $0x718] sm:$0xff] %vm1457_vm0, %v1428_v43  ;;  %v1431_v56 = vadd.f32 %v1175_v45, %v659_v39  ;;  %v662_v57 = vmul.f32 %v4210_v5, %v402_v40  ;;  %v929_v33 = vld [vmem:[%s5233_s1 + $0x7a0] sm:$0xff]  ;;  %v414_v38 = vld [vmem:[%s5234_s2 + $0x7a8] sm:$0xff]  ;;  %v415_v40 = vld [vmem:[%s5234_s2 + $0x7b0] sm:$0xff] }
  0xcf   : > { %1686 = vst.msk [vmem:[%s2527_s28 + $0x720] sm:$0xff] %vm1457_vm0, %v1429_v44  ;;  %v1178_v58 = vmul.f32 %v4193_v62, %v918_v41  ;;  %v663_v59 = vmul.f32 %v4210_v5, %v403_v42  ;;  %v1432_v0 = vadd.f32 %v1176_v50, %v660_v46  ;;  %v1179_v2 = vmul.f32 %v4193_v62, %v919_v47  ;;  %v930_v39 = vld [vmem:[%s5233_s1 + $0x7a8] sm:$0xff]  ;;  %v931_v45 = vld [vmem:[%s5233_s1 + $0x7b0] sm:$0xff]  ;;  %v416_v46 = vld [vmem:[%s5234_s2 + $0x7b8] sm:$0xff] }
  0xd0   : > { %1687 = vst.msk [vmem:[%s2527_s28 + $0x728] sm:$0xff] %vm1457_vm0, %v1430_v49  ;;  %v1433_v1 = vadd.f32 %v1177_v52, %v661_v51  ;;  %v664_v10 = vmul.f32 %v4210_v5, %v404_v48  ;;  %1688 = vst.msk [vmem:[%s2527_s28 + $0x730] sm:$0xff] %vm1457_vm0, %v1431_v56  ;;  %v1180_v6 = vmul.f32 %v4193_v62, %v920_v53  ;;  %v932_v51 = vld [vmem:[%s5233_s1 + $0x7b8] sm:$0xff]  ;;  %v417_v52 = vld [vmem:[%s5234_s2 + $0x7c0] sm:$0xff] }
  0xd1   : > { %v1434_v9 = vadd.f32 %v1178_v58, %v662_v57  ;;  %v665_v7 = vmul.f32 %v4210_v5, %v405_v54  ;;  %v1181_v8 = vmul.f32 %v4193_v62, %v921_v55  ;;  %1689 = vst.msk [vmem:[%s2527_s28 + $0x738] sm:$0xff] %vm1457_vm0, %v1432_v0  ;;  %v1435_v14 = vadd.f32 %v1179_v2, %v663_v59  ;;  %v933_v53 = vld [vmem:[%s5233_s1 + $0x7c0] sm:$0xff]  ;;  %v418_v58 = vld [vmem:[%s5234_s2 + $0x7c8] sm:$0xff]  ;;  %v935_v2 = vld [vmem:[%s5233_s1 + $0x7d0] sm:$0xff] }
  0xd2   : > { %1690 = vst.msk [vmem:[%s2527_s28 + $0x740] sm:$0xff] %vm1457_vm0, %v1433_v1  ;;  %v666_v15 = vmul.f32 %v4210_v5, %v406_v60  ;;  %v1182_v16 = vmul.f32 %v4193_v62, %v922_v61  ;;  %v667_v17 = vmul.f32 %v4210_v5, %v407_v63  ;;  %v1436_v21 = vadd.f32 %v1180_v6, %v664_v10  ;;  %v934_v59 = vld [vmem:[%s5233_s1 + $0x7c8] sm:$0xff]  ;;  %v419_v60 = vld [vmem:[%s5234_s2 + $0x7d0] sm:$0xff]  ;;  %v420_v10 = vld [vmem:[%s5234_s2 + $0x7d8] sm:$0xff] }
  0xd3   : > { %1691 = vst.msk [vmem:[%s2527_s28 + $0x748] sm:$0xff] %vm1457_vm0, %v1434_v9  ;;  %v1437_v22 = vadd.f32 %v1181_v8, %v665_v7  ;;  %v1183_v23 = vmul.f32 %v4193_v62, %v923_v3  ;;  %v668_v24 = vmul.f32 %v4210_v5, %v408_v4  ;;  %1692 = vst.msk [vmem:[%s2527_s28 + $0x750] sm:$0xff] %vm1457_vm0, %v1435_v14  ;;  %v936_v7 = vld [vmem:[%s5233_s1 + $0x7d8] sm:$0xff]  ;;  %v421_v8 = vld [vmem:[%s5234_s2 + $0x7e0] sm:$0xff] }
  0xd4   : > { %v1438_v27 = vadd.f32 %v1182_v16, %v666_v15  ;;  %v1184_v28 = vmul.f32 %v4193_v62, %v924_v11  ;;  %v669_v29 = vmul.f32 %v4210_v5, %v409_v12  ;;  %v1185_v30 = vmul.f32 %v4193_v62, %v925_v13  ;;  %1693 = vst.msk [vmem:[%s2527_s28 + $0x758] sm:$0xff] %vm1457_vm0, %v1436_v21  ;;  %v937_v11 = vld [vmem:[%s5233_s1 + $0x7e0] sm:$0xff]  ;;  %v422_v16 = vld [vmem:[%s5234_s2 + $0x7e8] sm:$0xff] }
  0xd5   : > { %1694 = vst.msk [vmem:[%s2527_s28 + $0x760] sm:$0xff] %vm1457_vm0, %v1437_v22  ;;  %v1439_v34 = vadd.f32 %v1183_v23, %v667_v17  ;;  %v670_v35 = vmul.f32 %v4210_v5, %v410_v18  ;;  %v1186_v36 = vmul.f32 %v4193_v62, %v926_v19  ;;  %v671_v37 = vmul.f32 %v4210_v5, %v411_v20  ;;  %v938_v17 = vld [vmem:[%s5233_s1 + $0x7e8] sm:$0xff]  ;;  %v423_v18 = vld [vmem:[%s5234_s2 + $0x7f0] sm:$0xff] }
  0xd6   : > { %1695 = vst.msk [vmem:[%s2527_s28 + $0x768] sm:$0xff] %vm1457_vm0, %v1438_v27  ;;  %v1440_v41 = vadd.f32 %v1184_v28, %v668_v24  ;;  %v1441_v42 = vadd.f32 %v1185_v30, %v669_v29  ;;  %v1187_v43 = vmul.f32 %v4193_v62, %v927_v25  ;;  %v672_v44 = vmul.f32 %v4210_v5, %v412_v26  ;;  %v939_v23 = vld [vmem:[%s5233_s1 + $0x7f0] sm:$0xff]  ;;  %v424_v24 = vld [vmem:[%s5234_s2 + $0x7f8] sm:$0xff] }
  0xd7   : > { %1696 = vst.msk [vmem:[%s2527_s28 + $0x770] sm:$0xff] %vm1457_vm0, %v1439_v34  ;;  %v1442_v47 = vadd.f32 %v1186_v36, %v670_v35  ;;  %v1188_v48 = vmul.f32 %v4193_v62, %v928_v31  ;;  %v673_v49 = vmul.f32 %v4210_v5, %v413_v32  ;;  %v1189_v50 = vmul.f32 %v4193_v62, %v929_v33  ;;  %v940_v29 = vld [vmem:[%s5233_s1 + $0x7f8] sm:$0xff] }
  0xd8   : > { %1697 = vst.msk [vmem:[%s2527_s28 + $0x778] sm:$0xff] %vm1457_vm0, %v1440_v41  ;;  %1698 = vst.msk [vmem:[%s2527_s28 + $0x780] sm:$0xff] %vm1457_vm0, %v1441_v42  ;;  %v1443_v54 = vadd.f32 %v1187_v43, %v671_v37  ;;  %v674_v55 = vmul.f32 %v4210_v5, %v414_v38  ;;  %v1190_v56 = vmul.f32 %v4193_v62, %v930_v39 }
  0xd9   : > { %v675_v57 = vmul.f32 %v4210_v5, %v415_v40  ;;  %1699 = vst.msk [vmem:[%s2527_s28 + $0x788] sm:$0xff] %vm1457_vm0, %v1442_v47  ;;  %v1444_v61 = vadd.f32 %v1188_v48, %v672_v44  ;;  %v1445_v63 = vadd.f32 %v1189_v50, %v673_v49  ;;  %v1191_v0 = vmul.f32 %v4193_v62, %v931_v45 }
  0xda   : > { %v676_v1 = vmul.f32 %v4210_v5, %v416_v46  ;;  %1700 = vst.msk [vmem:[%s2527_s28 + $0x790] sm:$0xff] %vm1457_vm0, %v1443_v54  ;;  %v1446_v3 = vadd.f32 %v1190_v56, %v674_v55  ;;  %v1192_v4 = vmul.f32 %v4193_v62, %v932_v51  ;;  %v677_v9 = vmul.f32 %v4210_v5, %v417_v52 }
  0xdb   : > { %v1193_v6 = vmul.f32 %v4193_v62, %v933_v53  ;;  %1701 = vst.msk [vmem:[%s2527_s28 + $0x798] sm:$0xff] %vm1457_vm0, %v1444_v61  ;;  %1702 = vst.msk [vmem:[%s2527_s28 + $0x7a0] sm:$0xff] %vm1457_vm0, %v1445_v63  ;;  %v1447_v12 = vadd.f32 %v1191_v0, %v675_v57  ;;  %v678_v13 = vmul.f32 %v4210_v5, %v418_v58 }
  0xdc   : > { %v1194_v14 = vmul.f32 %v4193_v62, %v934_v59  ;;  %v679_v15 = vmul.f32 %v4210_v5, %v419_v60  ;;  %1703 = vst.msk [vmem:[%s2527_s28 + $0x7a8] sm:$0xff] %vm1457_vm0, %v1446_v3  ;;  %v1448_v19 = vadd.f32 %v1192_v4, %v676_v1  ;;  %v1195_v21 = vmul.f32 %v4193_v62, %v935_v2 }
  0xdd   : > { %v1449_v20 = vadd.f32 %v1193_v6, %v677_v9  ;;  %v680_v22 = vmul.f32 %v4210_v5, %v420_v10  ;;  %1704 = vst.msk [vmem:[%s2527_s28 + $0x7b0] sm:$0xff] %vm1457_vm0, %v1447_v12  ;;  %v1196_v26 = vmul.f32 %v4193_v62, %v936_v7  ;;  %v681_v27 = vmul.f32 %v4210_v5, %v421_v8 }
  0xde   : > { %v1450_v25 = vadd.f32 %v1194_v14, %v678_v13  ;;  %v1197_v28 = vmul.f32 %v4193_v62, %v937_v11  ;;  %1705 = vst.msk [vmem:[%s2527_s28 + $0x7b8] sm:$0xff] %vm1457_vm0, %v1448_v19  ;;  %v1451_v30 = vadd.f32 %v1195_v21, %v679_v15  ;;  %v682_v31 = vmul.f32 %v4210_v5, %v422_v16 }
  0xdf   : > { %1706 = vst.msk [vmem:[%s2527_s28 + $0x7c0] sm:$0xff] %vm1457_vm0, %v1449_v20  ;;  %v1198_v32 = vmul.f32 %v4193_v62, %v938_v17  ;;  %v683_v33 = vmul.f32 %v4210_v5, %v423_v18  ;;  %v1452_v34 = vadd.f32 %v1196_v26, %v680_v22  ;;  %v1199_v36 = vmul.f32 %v4193_v62, %v939_v23 }
  0xe0   : > { %1707 = vst.msk [vmem:[%s2527_s28 + $0x7c8] sm:$0xff] %vm1457_vm0, %v1450_v25  ;;  %v1453_v35 = vadd.f32 %v1197_v28, %v681_v27  ;;  %v684_v37 = vmul.f32 %v4210_v5, %v424_v24  ;;  %1708 = vst.msk [vmem:[%s2527_s28 + $0x7d0] sm:$0xff] %vm1457_vm0, %v1451_v30  ;;  %v1200_v39 = vmul.f32 %v4193_v62, %v940_v29  ;;  %1720 = sbr.rel (!%p2432_p4) target bundleno = 293 (0x125), region = 36 }
  0xe1   : > { %v1454_v38 = vadd.f32 %v1198_v32, %v682_v31  ;;  %1709 = vst.msk [vmem:[%s2527_s28 + $0x7d8] sm:$0xff] %vm1457_vm0, %v1452_v34  ;;  %v1455_v40 = vadd.f32 %v1199_v36, %v683_v33 }
  0xe2   : > { %1710 = vst.msk [vmem:[%s2527_s28 + $0x7e0] sm:$0xff] %vm1457_vm0, %v1453_v35  ;;  %v1456_v41 = vadd.f32 %v1200_v39, %v684_v37 }
  0xe3   : > { %1711 = vst.msk [vmem:[%s2527_s28 + $0x7e8] sm:$0xff] %vm1457_vm0, %v1454_v38  ;;  %1712 = vst.msk [vmem:[%s2527_s28 + $0x7f0] sm:$0xff] %vm1457_vm0, %v1455_v40 }
  0xe4   : > { %1713 = vst.msk [vmem:[%s2527_s28 + $0x7f8] sm:$0xff] %vm1457_vm0, %v1456_v41 }
  0xe5   : > { %s5246_s11 = smov (!%p1723_p8, %s1722_s11), 256 }
  0xe6   : > { %s2192_s18 = sshll.u32 %s5246_s11, 7 }
  0xe7   : > { %p2195_p9 = scmp.eq.s32.totalorder %s2192_s18, 0 }
  0xe8   : > { %s5039_s20 = sshrl.u32 (!%p2195_p9), %s5246_s11, 6 }
  0xe9   : > { %1731 = sbr.rel (%p2195_p9) target bundleno = 293 (0x125), region = 40  ;;  %p2196_p10 = scmp.le.s32.totalorder (!%p2195_p9), %s5039_s20, 0 }
  0xee   : > { %2138 = sbr.rel (%p2196_p10) target bundleno = 276 (0x114), region = 116  ;;  %s5237_s15 = smov (!%p2196_p10), %s5033_s12 }
  0xef   : > { %s5238_s22 = smov (!%p2196_p10), %s2527_s28  ;;  %s5048_s23 = smov (!%p2196_p10), 0  }
  0xf0   : > { %s5050_s24 = smov (!%p2196_p10), 0  }
  0xf3 LB: >> { %v1920_v62 = vld [vmem:[%s2364_s22] sm:$0xff]  ;;  %v1922_v5 = vld [vmem:[%s2364_s22 + $0x8] sm:$0xff]  ;;  %v1924_v42 = vld [vmem:[%s2364_s22 + $0x10] sm:$0xff]  ;;  %s2048_s21 = sadd.s32 1, %s2368_s23  ;;  %s1914_s24 = sadd.s32 1, %s2372_s24   ;;  %s2372_s24 = sphi %s5050_s24, %s1914_s24   ;;  %s2368_s23 = sphi %s5048_s23, %s5241_s23   ;;  %s2364_s22 = sphi %s5238_s22, %s5240_s22   ;;  %s2360_s15 = sphi %s5237_s15, %s5239_s15  }
  0xf4   : >> { %1921 = vst [vmem:[%s2360_s15] sm:$0xff] %v1920_v62  ;;  %1923 = vst [vmem:[%s2360_s15 + $0x8] sm:$0xff] %v1922_v5  ;;  %v1926_v43 = vld [vmem:[%s2364_s22 + $0x18] sm:$0xff]  ;;  %v1928_v44 = vld [vmem:[%s2364_s22 + $0x20] sm:$0xff]  ;;  %p2049_p11 = scmp.ge.s32.totalorder %s2048_s21, %s5039_s20  ;;  %p1913_p12 = scmp.ge.s32.totalorder %s1914_s24, %s5039_s20 }
  0xf5   : >> { %1925 = vst [vmem:[%s2360_s15 + $0x10] sm:$0xff] %v1924_v42  ;;  %v1930_v45 = vld [vmem:[%s2364_s22 + $0x28] sm:$0xff]  ;;  %1927 = vst [vmem:[%s2360_s15 + $0x18] sm:$0xff] %v1926_v43  ;;  %v1932_v46 = vld [vmem:[%s2364_s22 + $0x30] sm:$0xff] }
  0xf6   : >> { %1929 = vst [vmem:[%s2360_s15 + $0x20] sm:$0xff] %v1928_v44  ;;  %1931 = vst [vmem:[%s2360_s15 + $0x28] sm:$0xff] %v1930_v45  ;;  %v1934_v47 = vld [vmem:[%s2364_s22 + $0x38] sm:$0xff]  ;;  %v1936_v48 = vld [vmem:[%s2364_s22 + $0x40] sm:$0xff]  ;;  %s5248_s21 = smov (%p2049_p11, %s2048_s21), 0 }
  0xf7   : >> { %1933 = vst [vmem:[%s2360_s15 + $0x30] sm:$0xff] %v1932_v46  ;;  %1935 = vst [vmem:[%s2360_s15 + $0x38] sm:$0xff] %v1934_v47  ;;  %v1938_v49 = vld [vmem:[%s2364_s22 + $0x48] sm:$0xff]  ;;  %v1940_v50 = vld [vmem:[%s2364_s22 + $0x50] sm:$0xff]  ;;  %s2197_s25 = sshll.u32 %s5248_s21, 9  ;;  %s5241_s23 = smov %s5248_s21 }
  0xf8   : >> { %1937 = vst [vmem:[%s2360_s15 + $0x40] sm:$0xff] %v1936_v48  ;;  %v1942_v51 = vld [vmem:[%s2364_s22 + $0x58] sm:$0xff]  ;;  %1939 = vst [vmem:[%s2360_s15 + $0x48] sm:$0xff] %v1938_v49  ;;  %v1944_v52 = vld [vmem:[%s2364_s22 + $0x60] sm:$0xff]  ;;  %s5106_s26 = scalar_lea.vmem %s2527_s28, %s2197_s25 [#allocation2]   ;;  %s5109_s27 = scalar_lea.vmem %s5033_s12, %s2197_s25  }
  0xf9   : >> { %1941 = vst [vmem:[%s2360_s15 + $0x50] sm:$0xff] %v1940_v50  ;;  %1943 = vst [vmem:[%s2360_s15 + $0x58] sm:$0xff] %v1942_v51  ;;  %v1946_v53 = vld [vmem:[%s2364_s22 + $0x68] sm:$0xff]  ;;  %v1948_v54 = vld [vmem:[%s2364_s22 + $0x70] sm:$0xff] }
  0xfa   : >> { %1945 = vst [vmem:[%s2360_s15 + $0x60] sm:$0xff] %v1944_v52  ;;  %1947 = vst [vmem:[%s2360_s15 + $0x68] sm:$0xff] %v1946_v53  ;;  %v1950_v55 = vld [vmem:[%s2364_s22 + $0x78] sm:$0xff]  ;;  %v1952_v56 = vld [vmem:[%s2364_s22 + $0x80] sm:$0xff] }
  0xfb   : >> { %1949 = vst [vmem:[%s2360_s15 + $0x70] sm:$0xff] %v1948_v54  ;;  %v1954_v57 = vld [vmem:[%s2364_s22 + $0x88] sm:$0xff]  ;;  %1951 = vst [vmem:[%s2360_s15 + $0x78] sm:$0xff] %v1950_v55  ;;  %v1956_v58 = vld [vmem:[%s2364_s22 + $0x90] sm:$0xff] }
  0xfc   : >> { %1953 = vst [vmem:[%s2360_s15 + $0x80] sm:$0xff] %v1952_v56  ;;  %1955 = vst [vmem:[%s2360_s15 + $0x88] sm:$0xff] %v1954_v57  ;;  %v1958_v59 = vld [vmem:[%s2364_s22 + $0x98] sm:$0xff]  ;;  %v1960_v60 = vld [vmem:[%s2364_s22 + $0xa0] sm:$0xff] }
  0xfd   : >> { %1957 = vst [vmem:[%s2360_s15 + $0x90] sm:$0xff] %v1956_v58  ;;  %1959 = vst [vmem:[%s2360_s15 + $0x98] sm:$0xff] %v1958_v59  ;;  %v1962_v61 = vld [vmem:[%s2364_s22 + $0xa8] sm:$0xff]  ;;  %v1964_v63 = vld [vmem:[%s2364_s22 + $0xb0] sm:$0xff] }
  0xfe   : >> { %1961 = vst [vmem:[%s2360_s15 + $0xa0] sm:$0xff] %v1960_v60  ;;  %v1966_v0 = vld [vmem:[%s2364_s22 + $0xb8] sm:$0xff]  ;;  %1963 = vst [vmem:[%s2360_s15 + $0xa8] sm:$0xff] %v1962_v61  ;;  %v1968_v1 = vld [vmem:[%s2364_s22 + $0xc0] sm:$0xff] }
  0xff   : >> { %1965 = vst [vmem:[%s2360_s15 + $0xb0] sm:$0xff] %v1964_v63  ;;  %1967 = vst [vmem:[%s2360_s15 + $0xb8] sm:$0xff] %v1966_v0  ;;  %v1970_v2 = vld [vmem:[%s2364_s22 + $0xc8] sm:$0xff]  ;;  %v1972_v10 = vld [vmem:[%s2364_s22 + $0xd0] sm:$0xff] }
 0x100   : >> { %1969 = vst [vmem:[%s2360_s15 + $0xc0] sm:$0xff] %v1968_v1  ;;  %1971 = vst [vmem:[%s2360_s15 + $0xc8] sm:$0xff] %v1970_v2  ;;  %v1974_v3 = vld [vmem:[%s2364_s22 + $0xd8] sm:$0xff]  ;;  %v1976_v4 = vld [vmem:[%s2364_s22 + $0xe0] sm:$0xff] }
 0x101   : >> { %1973 = vst [vmem:[%s2360_s15 + $0xd0] sm:$0xff] %v1972_v10  ;;  %v1978_v9 = vld [vmem:[%s2364_s22 + $0xe8] sm:$0xff]  ;;  %1975 = vst [vmem:[%s2360_s15 + $0xd8] sm:$0xff] %v1974_v3  ;;  %v1980_v6 = vld [vmem:[%s2364_s22 + $0xf0] sm:$0xff] }
 0x102   : >> { %1977 = vst [vmem:[%s2360_s15 + $0xe0] sm:$0xff] %v1976_v4  ;;  %1979 = vst [vmem:[%s2360_s15 + $0xe8] sm:$0xff] %v1978_v9  ;;  %v1982_v7 = vld [vmem:[%s2364_s22 + $0xf8] sm:$0xff]  ;;  %v1984_v8 = vld [vmem:[%s2364_s22 + $0x100] sm:$0xff] }
 0x103   : >> { %1981 = vst [vmem:[%s2360_s15 + $0xf0] sm:$0xff] %v1980_v6  ;;  %1983 = vst [vmem:[%s2360_s15 + $0xf8] sm:$0xff] %v1982_v7  ;;  %v1986_v11 = vld [vmem:[%s2364_s22 + $0x108] sm:$0xff]  ;;  %v1988_v12 = vld [vmem:[%s2364_s22 + $0x110] sm:$0xff] }
 0x104   : >> { %1985 = vst [vmem:[%s2360_s15 + $0x100] sm:$0xff] %v1984_v8  ;;  %v1990_v13 = vld [vmem:[%s2364_s22 + $0x118] sm:$0xff]  ;;  %1987 = vst [vmem:[%s2360_s15 + $0x108] sm:$0xff] %v1986_v11  ;;  %v1992_v14 = vld [vmem:[%s2364_s22 + $0x120] sm:$0xff] }
 0x105   : >> { %1989 = vst [vmem:[%s2360_s15 + $0x110] sm:$0xff] %v1988_v12  ;;  %1991 = vst [vmem:[%s2360_s15 + $0x118] sm:$0xff] %v1990_v13  ;;  %v1994_v15 = vld [vmem:[%s2364_s22 + $0x128] sm:$0xff]  ;;  %v1996_v16 = vld [vmem:[%s2364_s22 + $0x130] sm:$0xff] }
 0x106   : >> { %1993 = vst [vmem:[%s2360_s15 + $0x120] sm:$0xff] %v1992_v14  ;;  %1995 = vst [vmem:[%s2360_s15 + $0x128] sm:$0xff] %v1994_v15  ;;  %v1998_v17 = vld [vmem:[%s2364_s22 + $0x138] sm:$0xff]  ;;  %v2000_v18 = vld [vmem:[%s2364_s22 + $0x140] sm:$0xff] }
 0x107   : >> { %1997 = vst [vmem:[%s2360_s15 + $0x130] sm:$0xff] %v1996_v16  ;;  %v2002_v19 = vld [vmem:[%s2364_s22 + $0x148] sm:$0xff]  ;;  %1999 = vst [vmem:[%s2360_s15 + $0x138] sm:$0xff] %v1998_v17  ;;  %v2004_v20 = vld [vmem:[%s2364_s22 + $0x150] sm:$0xff] }
 0x108   : >> { %2001 = vst [vmem:[%s2360_s15 + $0x140] sm:$0xff] %v2000_v18  ;;  %2003 = vst [vmem:[%s2360_s15 + $0x148] sm:$0xff] %v2002_v19  ;;  %v2006_v21 = vld [vmem:[%s2364_s22 + $0x158] sm:$0xff]  ;;  %v2008_v22 = vld [vmem:[%s2364_s22 + $0x160] sm:$0xff] }
 0x109   : >> { %2005 = vst [vmem:[%s2360_s15 + $0x150] sm:$0xff] %v2004_v20  ;;  %2007 = vst [vmem:[%s2360_s15 + $0x158] sm:$0xff] %v2006_v21  ;;  %v2010_v23 = vld [vmem:[%s2364_s22 + $0x168] sm:$0xff]  ;;  %v2012_v24 = vld [vmem:[%s2364_s22 + $0x170] sm:$0xff] }
 0x10a   : >> { %2009 = vst [vmem:[%s2360_s15 + $0x160] sm:$0xff] %v2008_v22  ;;  %v2014_v25 = vld [vmem:[%s2364_s22 + $0x178] sm:$0xff]  ;;  %2011 = vst [vmem:[%s2360_s15 + $0x168] sm:$0xff] %v2010_v23  ;;  %v2016_v26 = vld [vmem:[%s2364_s22 + $0x180] sm:$0xff] }
 0x10b   : >> { %2013 = vst [vmem:[%s2360_s15 + $0x170] sm:$0xff] %v2012_v24  ;;  %2015 = vst [vmem:[%s2360_s15 + $0x178] sm:$0xff] %v2014_v25  ;;  %v2018_v27 = vld [vmem:[%s2364_s22 + $0x188] sm:$0xff]  ;;  %v2020_v28 = vld [vmem:[%s2364_s22 + $0x190] sm:$0xff] }
 0x10c   : >> { %2017 = vst [vmem:[%s2360_s15 + $0x180] sm:$0xff] %v2016_v26  ;;  %2019 = vst [vmem:[%s2360_s15 + $0x188] sm:$0xff] %v2018_v27  ;;  %v2022_v29 = vld [vmem:[%s2364_s22 + $0x198] sm:$0xff]  ;;  %v2024_v30 = vld [vmem:[%s2364_s22 + $0x1a0] sm:$0xff] }
 0x10d   : >> { %2021 = vst [vmem:[%s2360_s15 + $0x190] sm:$0xff] %v2020_v28  ;;  %v2026_v31 = vld [vmem:[%s2364_s22 + $0x1a8] sm:$0xff]  ;;  %2023 = vst [vmem:[%s2360_s15 + $0x198] sm:$0xff] %v2022_v29  ;;  %v2028_v32 = vld [vmem:[%s2364_s22 + $0x1b0] sm:$0xff] }
 0x10e   : >> { %2025 = vst [vmem:[%s2360_s15 + $0x1a0] sm:$0xff] %v2024_v30  ;;  %2027 = vst [vmem:[%s2360_s15 + $0x1a8] sm:$0xff] %v2026_v31  ;;  %v2030_v33 = vld [vmem:[%s2364_s22 + $0x1b8] sm:$0xff]  ;;  %v2032_v34 = vld [vmem:[%s2364_s22 + $0x1c0] sm:$0xff] }
 0x10f   : >> { %2029 = vst [vmem:[%s2360_s15 + $0x1b0] sm:$0xff] %v2028_v32  ;;  %2031 = vst [vmem:[%s2360_s15 + $0x1b8] sm:$0xff] %v2030_v33  ;;  %v2034_v35 = vld [vmem:[%s2364_s22 + $0x1c8] sm:$0xff]  ;;  %v2036_v36 = vld [vmem:[%s2364_s22 + $0x1d0] sm:$0xff]  ;;  %1916 = sbr.rel (!%p1913_p12) target bundleno = 243 (0xf3), region = 122 }
 0x110   : >> { %2033 = vst [vmem:[%s2360_s15 + $0x1c0] sm:$0xff] %v2032_v34  ;;  %v2038_v37 = vld [vmem:[%s2364_s22 + $0x1d8] sm:$0xff]  ;;  %2035 = vst [vmem:[%s2360_s15 + $0x1c8] sm:$0xff] %v2034_v35  ;;  %v2040_v38 = vld [vmem:[%s2364_s22 + $0x1e0] sm:$0xff] }
 0x111   : >> { %2037 = vst [vmem:[%s2360_s15 + $0x1d0] sm:$0xff] %v2036_v36  ;;  %2039 = vst [vmem:[%s2360_s15 + $0x1d8] sm:$0xff] %v2038_v37  ;;  %v2042_v39 = vld [vmem:[%s2364_s22 + $0x1e8] sm:$0xff]  ;;  %v2044_v40 = vld [vmem:[%s2364_s22 + $0x1f0] sm:$0xff] }
 0x112   : >> { %2041 = vst [vmem:[%s2360_s15 + $0x1e0] sm:$0xff] %v2040_v38  ;;  %2043 = vst [vmem:[%s2360_s15 + $0x1e8] sm:$0xff] %v2042_v39  ;;  %v2046_v41 = vld [vmem:[%s2364_s22 + $0x1f8] sm:$0xff]  ;;  %s5240_s22 = smov %s5106_s26 }
 0x113   : >> { %2045 = vst [vmem:[%s2360_s15 + $0x1f0] sm:$0xff] %v2044_v40  ;;  %2047 = vst [vmem:[%s2360_s15 + $0x1f8] sm:$0xff] %v2046_v41  ;;  %s5239_s15 = smov %s5109_s27 }
 0x114 PF: > { %s5214_s29 = sand.u32 63, %s5246_s11   ;;  %s2208_s30 = sshll.u32 %s5039_s20, 9 }
 0x115   : > { %s2059_s9 = scalar_lea.vmem %s2527_s28, %s2208_s30 [#allocation2]   ;;  %s2061_s4 = scalar_lea.vmem %s5033_s12, %s2208_s30  }
 0x116   : > { %p2202_p13 = scmp.le.s32.totalorder %s5214_s29, 0 }
 0x117   : > { %s2374_s5 = smov (!%p2202_p13), %s2061_s4   ;;  %s2378_s6 = smov (!%p2202_p13), %s2059_s9  }
 0x118   : > { %2152 = sbr.rel (%p2202_p13) target bundleno = 293 (0x125), region = 127  ;;  %s2382_s7 = smov (!%p2202_p13), 0  }
 0x119   : > { %s2386_s8 = smov (!%p2202_p13), 0  }
 0x11d LB: >> { %v2071_v62 = vld [vmem:[%s2380_s6] sm:$0xff]  ;;  %s2073_s10 = sadd.s32 1, %s2384_s7  ;;  %s2065_s8 = sadd.s32 1, %s2388_s8   ;;  %s2388_s8 = sphi %s2386_s8, %s2065_s8   ;;  %s2384_s7 = sphi %s2382_s7, %s2383_s7   ;;  %s2380_s6 = sphi %s2378_s6, %s2078_s6   ;;  %s2376_s5 = sphi %s2374_s5, %s2079_s5  }
 0x11e   : >> { %2072 = vst [vmem:[%s2376_s5] sm:$0xff] %v2071_v62  ;;  %p2074_p0 = scmp.ge.s32.totalorder %s2073_s10, %s5214_s29  ;;  %p2064_p1 = scmp.ge.s32.totalorder %s2065_s8, %s5214_s29 }
 0x120   : >> { %s5250_s10 = smov (%p2074_p0, %s2073_s10), 0  ;;  %2067 = sbr.rel (!%p2064_p1) target bundleno = 285 (0x11d), region = 133 }
 0x121   : >> { %s2203_s28 = sshll.u32 %s5250_s10, 3  ;;  %s2383_s7 = smov %s5250_s10  }
 0x122   : >> { %s2078_s6 = scalar_lea.vmem %s2059_s9, %s2203_s28 [#allocation2]   ;;  %s2079_s5 = scalar_lea.vmem %s2061_s4, %s2203_s28  }
 0x125 PF: > { %p10_p2 = scmp.ge.s32.totalorder %s2423_s16, 5   ;;  %s5242_s12 = smov %s2352_s13 }
 0x126   : > { %s5243_s13 = smov %s2430_s19  ;;  %s5244_s14 = smov %s2423_s16 }
 0x127   :  { %12 = sbr.rel (!%p10_p2) target bundleno = 2 (0x2), region = 144 }

</bundles_post_ra>
